<compile_context>
chip_gen: v7x
topology: tpu7x:2x2x1
jax: 0.10.0
libtpu: 0.0.40
codegen_flags: <defaults>
</compile_context>

<pallas_src>
import functools
import math

import jax
import jax.numpy as jnp
from jax import lax
from jax.experimental import pallas as pl
from jax.experimental.pallas import tpu as pltpu


# ----------------------------------------------------------------------------
# Pallas kernel: grid = (core_split, edge_tiles).  One step processes a
# (TE, N) tile of edges; per-core partial sums are stored at the last step.
# ----------------------------------------------------------------------------
def gat_roost_kernel(xa_ref, xb_ref, posb_ref, w2_ref, bcast_ref, r_ref, c_ref,
                     oa_ref, om_ref, acc_a, acc_m, *, hcout, slope):
    # xa_ref    : [N, K]        bf16   x @ WA (row-half projections, all heads)
    # xb_ref    : [N, K]        bf16   x @ WB (col-half projections, all heads)
    # posb_ref  : [N, 1]        bf16   per-node weights ("pos")
    # w2_ref    : [K, HCout+H]  f32    merged block-diag second-layer weights
    # bcast_ref : [H, HCout]    f32    block one-hot head->channel broadcast
    # r_ref     : [TE, N]       bf16   one-hot of row (destination) indices
    # c_ref     : [TE, N]       bf16   one-hot of col (source) indices
    # oa_ref    : [1, N, H]     f32    per-core partial alpha rowsums
    # om_ref    : [1, N, HCout] f32    per-core partial aggregated messages
    # acc_a     : [N, H]        f32 scratch
    # acc_m     : [N, HCout]    f32 scratch
    k = pl.program_id(1)

    def leaky(v):
        return jnp.where(v >= 0, v, slope * v)

    @pl.when(k == 0)
    def _init():
        acc_a[...] = jnp.zeros_like(acc_a)
        acc_m[...] = jnp.zeros_like(acc_m)

    r_blk = r_ref[...]                                                  # [TE,N] bf16
    c_blk = c_ref[...]                                                  # [TE,N] bf16

    # Gathers of the (pre-projected) node features: three MXU passes total.
    er = jnp.dot(r_blk, xa_ref[...], preferred_element_type=jnp.float32)   # [TE,K]
    ec = jnp.dot(c_blk, xb_ref[...], preferred_element_type=jnp.float32)   # [TE,K]
    pos_col = jnp.dot(c_blk, posb_ref[...],
                      preferred_element_type=jnp.float32)                  # [TE,1]

    # First MLP layer (gate_nn & message_nn, all heads):
    # lin1(cat[x_row, x_col]) == x_row @ W1_row + x_col @ W1_col
    h1 = leaky(er + ec)                                                 # [TE,K]

    # Merged second layer: msg in the first HCout (=128) lanes, gate in the tail.
    gm = leaky(jnp.dot(h1, w2_ref[...], preferred_element_type=jnp.float32))
    msg = gm[:, :hcout]                                                 # [TE,HCout]
    gate = gm[:, hcout:]                                                # [TE,H]

    # Unnormalised attention; 1/rowsum is applied after aggregation (same math).
    alpha = pos_col * jnp.exp(gate)                                     # [TE,H]

    # Head->channel broadcast via a tiny MXU dot (no lane slices / concatenate).
    alpha_b = jnp.dot(alpha, bcast_ref[...],
                      preferred_element_type=jnp.float32)               # [TE,HCout]
    scat_m = (alpha_b * msg).astype(jnp.bfloat16)                       # [TE,HCout]
    scat_a = alpha.astype(jnp.bfloat16)                                 # [TE,H]

    # Two aligned transposed contractions (scatter-add), f32 accumulation.
    acc_m[...] += lax.dot_general(r_blk, scat_m,
                                  dimension_numbers=(((0,), (0,)), ((), ())),
                                  preferred_element_type=jnp.float32)   # [N,HCout]
    acc_a[...] += lax.dot_general(r_blk, scat_a,
                                  dimension_numbers=(((0,), (0,)), ((), ())),
                                  preferred_element_type=jnp.float32)   # [N,H]

    @pl.when(k == pl.num_programs(1) - 1)
    def _finalize():
        oa_ref[0] = acc_a[...]
        om_ref[0] = acc_m[...]


# ----------------------------------------------------------------------------
# Tile-size / VMEM-budget derivation (re-derived per TPU generation).
# ----------------------------------------------------------------------------
def _derive_edge_tile_and_vmem(E, N, K, H, Cout, num_core_splits):
    hcout = H * Cout
    try:
        phys = int(getattr(pltpu.get_tpu_info(), "vmem_capacity_bytes", 64 << 20))
    except Exception:
        phys = 64 << 20                       # v7x per-core VMEM; safe lower bound
    budget = int(phys * 0.70)                 # leave compiler-scratch headroom
    lane = 128

    def pad(w):
        return max(lane, ((w + lane - 1) // lane) * lane)

    resident = (
        2 * 2 * N * pad(K) * 2                # XA, XB bf16 (double-buffered)
        + 2 * N * lane * 2                    # pos column (lane-padded)
        + 2 * K * pad(hcout + H) * 4          # merged W2
        + 2 * 8 * pad(hcout) * 4              # BCAST
        + N * (pad(hcout) + lane) * 4         # acc scratches
        + 2 * N * (pad(hcout) + lane) * 4     # the two outputs (double-buffered)
    )
    te = 256                                  # review target for v6e/v7x (>=128 on v5e)
    while te > 16 and resident + 2 * 2 * te * N * 2 > budget:
        te //= 2
    te = max(16, (te // 16) * 16)
    per_core = -(-E // num_core_splits)       # don't over-pad tiny graphs
    te = min(te, max(16, ((per_core + 15) // 16) * 16))
    need = resident + 2 * 2 * te * N * 2
    vmem_limit = int(min(phys, max(need + (16 << 20), 32 << 20)))
    return te, vmem_limit


def _edge_block_spec(te, n, index_map, buffers):
    # On v6e (most HBM-bound gen) set buffers=3 once TE is large; default depth-2
    # pipelining everywhere else.
    if buffers and buffers > 2:
        return pl.BlockSpec((te, n), index_map, pipeline_mode=pl.Buffered(int(buffers)))
    return pl.BlockSpec((te, n), index_map)


# ----------------------------------------------------------------------------
# Wrapper: packs per-head weights, pre-projects nodes, builds bf16 one-hots,
# sets up the (core, edge-tile) grid and does the tiny normalize/mean epilogue.
# ----------------------------------------------------------------------------
def gat_roost_forward(x, edge_index, pos, params, *, heads, out_channels,
                      f_dim, g_dim, negative_slope=0.2, edge_tile=None,
                      num_core_splits=2, rc_buffers=2):
    """x: [N, Cin] f32; edge_index: [2, E] int32; pos: [N] f32.
    params: list of (g_w1 [f,2Cin], g_w2 [1,f], m_w1 [g,2Cin], m_w2 [Cout,g])."""
    N, cin = x.shape
    E = edge_index.shape[1]
    H, Cout = heads, out_channels
    K = H * (f_dim + g_dim)          # per-edge hidden width (128 in the demo)
    Hf = H * f_dim
    HCout = H * Cout

    row, col = edge_index[0], edge_index[1]

    # Pack first-layer weights (row-half / col-half) and the merged block-diag
    # second-layer weight (messages first -> lane-aligned, gate in the tail cols).
    WA = jnp.zeros((cin, K), jnp.float32)
    WB = jnp.zeros((cin, K), jnp.float32)
    W2 = jnp.zeros((K, HCout + H), jnp.float32)
    for h, (g_w1, g_w2, m_w1, m_w2) in enumerate(params):
        WA = WA.at[:, h * f_dim:(h + 1) * f_dim].set(g_w1[:, :cin].T)
        WB = WB.at[:, h * f_dim:(h + 1) * f_dim].set(g_w1[:, cin:].T)
        WA = WA.at[:, Hf + h * g_dim:Hf + (h + 1) * g_dim].set(m_w1[:, :cin].T)
        WB = WB.at[:, Hf + h * g_dim:Hf + (h + 1) * g_dim].set(m_w1[:, cin:].T)
        W2 = W2.at[h * f_dim:(h + 1) * f_dim, HCout + h].set(g_w2[0, :])
        W2 = W2.at[Hf + h * g_dim:Hf + (h + 1) * g_dim,
                   h * Cout:(h + 1) * Cout].set(m_w2.T)

    # Head -> channel block-one-hot broadcast matrix.
    BCAST = jnp.zeros((H, HCout), jnp.float32)
    for h in range(H):
        BCAST = BCAST.at[h, h * Cout:(h + 1) * Cout].set(1.0)

    # Once-per-call node projections, hoisted out of the grid (bf16 residents).
    XA = jnp.dot(x.astype(jnp.float32), WA).astype(jnp.bfloat16)        # [N, K]
    XB = jnp.dot(x.astype(jnp.float32), WB).astype(jnp.bfloat16)        # [N, K]
    posb = pos.reshape(N, 1).astype(jnp.bfloat16)                       # [N, 1]

    NC = max(1, int(num_core_splits))
    if edge_tile is None:
        TE, vmem_limit = _derive_edge_tile_and_vmem(E, N, K, H, Cout, NC)
    else:
        TE = int(edge_tile)
        _, vmem_limit = _derive_edge_tile_and_vmem(E, N, K, H, Cout, NC)
    assert TE % 16 == 0

    # Pad the edge list to a multiple of NC*TE with zero one-hot rows (exact).
    E_pad = pl.cdiv(E, NC * TE) * (NC * TE)
    if E_pad != E:
        fill = jnp.full((E_pad - E,), -1, row.dtype)   # one_hot(-1) == all zeros
        row_p = jnp.concatenate([row, fill])
        col_p = jnp.concatenate([col, fill])
    else:
        row_p, col_p = row, col
    R = jax.nn.one_hot(row_p, N, dtype=jnp.bfloat16)   # [E_pad, N]
    C = jax.nn.one_hot(col_p, N, dtype=jnp.bfloat16)   # [E_pad, N]

    KT = E_pad // (NC * TE)
    grid = (NC, KT)

    kernel = functools.partial(gat_roost_kernel, hcout=HCout,
                               slope=float(negative_slope))

    const = lambda c, k: (0, 0)
    edge_map = lambda c, k: (c * KT + k, 0)

    partial_a, partial_m = pl.pallas_call(
        kernel,
        out_shape=(jax.ShapeDtypeStruct((NC, N, H), jnp.float32),
                   jax.ShapeDtypeStruct((NC, N, HCout), jnp.float32)),
        grid_spec=pltpu.PrefetchScalarGridSpec(
            num_scalar_prefetch=0,
            grid=grid,
            in_specs=[
                pl.BlockSpec((N, K), const),                    # XA
                pl.BlockSpec((N, K), const),                    # XB
                pl.BlockSpec((N, 1), const),                    # pos
                pl.BlockSpec((K, HCout + H), const),            # W2
                pl.BlockSpec((H, HCout), const),                # BCAST
                _edge_block_spec(TE, N, edge_map, rc_buffers),  # R edge tile
                _edge_block_spec(TE, N, edge_map, rc_buffers),  # C edge tile
            ],
            out_specs=[
                pl.BlockSpec((1, N, H), lambda c, k: (c, 0, 0)),
                pl.BlockSpec((1, N, HCout), lambda c, k: (c, 0, 0)),
            ],
            scratch_shapes=[
                pltpu.VMEM((N, H), jnp.float32),        # alpha rowsum accumulator
                pltpu.VMEM((N, HCout), jnp.float32),    # message accumulator
            ],
        ),
        compiler_params=pltpu.CompilerParams(
            dimension_semantics=("parallel", "arbitrary"),
            vmem_limit_bytes=vmem_limit),
    )(XA, XB, posb, W2, BCAST, R, C)

    # Tiny epilogue in plain JAX: reduce per-core partials, normalize per head
    # (exact reciprocal, zero-indegree guarded), mean over heads.
    alpha_sum = partial_a.sum(axis=0)                   # [N, H]
    msg_sum = partial_m.sum(axis=0)                     # [N, H*Cout]
    safe = jnp.where(alpha_sum > 0.0, alpha_sum, 1.0)
    inv = jnp.where(alpha_sum > 0.0, 1.0 / safe + 1e-10, 0.0)
    out = (msg_sum.reshape(N, H, Cout) * inv[:, :, None]).mean(axis=1)
    return out.astype(jnp.float32)                      # [N, Cout]


# ----------------------------------------------------------------------------
# Pure-JAX reference mirroring the PyTorch GATRoostLayer forward exactly.
# ----------------------------------------------------------------------------
def gat_roost_reference(x, edge_index, pos, params, negative_slope=0.2):
    N = x.shape[0]
    row, col = edge_index[0], edge_index[1]

    def leaky(v):
        return jnp.where(v >= 0, v, negative_slope * v)

    e = jnp.concatenate([x[row], x[col]], axis=-1)                 # [E, 2Cin]
    head_outs = []
    for (g_w1, g_w2, m_w1, m_w2) in params:
        gate = leaky(leaky(e @ g_w1.T) @ g_w2.T)                   # [E, 1]
        msg = leaky(leaky(e @ m_w1.T) @ m_w2.T)                    # [E, Cout]
        alpha = jnp.exp(gate) * pos[col][:, None]
        rowsum = jax.ops.segment_sum(alpha, row, num_segments=N)
        inv = rowsum ** (-1) + 1e-10
        alpha = alpha * inv[row]
        out = jax.ops.segment_sum(alpha * msg, row, num_segments=N)
        head_outs.append(out)
    return jnp.mean(jnp.stack(head_outs, axis=0), axis=0)          # [N, Cout]


# ----------------------------------------------------------------------------
# Deterministic parameter init (xavier_uniform with leaky_relu gain, bias=False)
# ----------------------------------------------------------------------------
def init_params(key, in_channels, out_channels, f_dim, g_dim, heads, slope):
    gain = math.sqrt(2.0 / (1.0 + slope ** 2))

    def xavier(k, shape):              # shape = [fan_out, fan_in]
        bound = gain * math.sqrt(6.0 / (shape[0] + shape[1]))
        return jax.random.uniform(k, shape, jnp.float32, -bound, bound)

    params = []
    keys = jax.random.split(key, heads * 4)
    for h in range(heads):
        k1, k2, k3, k4 = keys[4 * h:4 * h + 4]
        g_w1 = xavier(k1, (f_dim, 2 * in_channels))     # gate_nn.lin1
        g_w2 = xavier(k2, (1, f_dim))                   # gate_nn.lin2
        m_w1 = xavier(k3, (g_dim, 2 * in_channels))     # message_nn.lin1
        m_w2 = xavier(k4, (out_channels, g_dim))        # message_nn.lin2
        params.append((g_w1, g_w2, m_w1, m_w2))
    return params


if __name__ == "__main__":
    key = jax.random.PRNGKey(0)
    N, E = 128, 1024
    in_channels, out_channels = 8, 32
    heads, f_dim, g_dim = 4, 16, 16            # K = 128, H*Cout = 128 (lane dense)
    negative_slope = 0.2

    kx, kp, kc, kr, kw = jax.random.split(key, 5)
    x = jax.random.normal(kx, (N, in_channels), jnp.float32)
    pos = jax.random.uniform(kp, (N,), jnp.float32, minval=0.5, maxval=1.5)
    # Node 0 deliberately has zero in-degree -> exercises the rowsum==0 guard.
    row = jax.random.randint(kr, (E,), 1, N, dtype=jnp.int32)
    col = jax.random.randint(kc, (E,), 0, N, dtype=jnp.int32)
    edge_index = jnp.stack([row, col], axis=0)          # [2, E]

    params = init_params(kw, in_channels, out_channels, f_dim, g_dim, heads,
                         negative_slope)

    out = gat_roost_forward(x, edge_index, pos, params, heads=heads,
                            out_channels=out_channels, f_dim=f_dim, g_dim=g_dim,
                            negative_slope=negative_slope)
    out = jax.block_until_ready(out)

    ref = gat_roost_reference(x, edge_index, pos, params,
                              negative_slope=negative_slope)
    assert out.shape == (N, out_channels)
    assert bool(jnp.all(jnp.isfinite(out))), "non-finite values in kernel output"
    # zero-indegree node must be exactly zero (matches reference semantics)
    assert bool(jnp.allclose(out[0], 0.0, atol=1e-6))
    # bf16 MXU gather/scatter streams (f32 accumulation): ~1% level accuracy.
    assert jnp.allclose(out, ref, rtol=5e-2, atol=5e-2), \
        f"mismatch vs reference, max abs err = {jnp.max(jnp.abs(out - ref))}"

    print("KERNEL_OK")
</pallas_src>

<mosaic_0001>
module attributes {stable_mosaic.version = 11 : i64} {
  func.func @gat_roost_kernel(%arg0: i32, %arg1: i32, %arg2: memref<128x128xbf16, #tpu.memory_space<vmem>>, %arg3: memref<128x128xbf16, #tpu.memory_space<vmem>>, %arg4: memref<128x1xbf16, #tpu.memory_space<vmem>>, %arg5: memref<128x132xf32, #tpu.memory_space<vmem>>, %arg6: memref<4x128xf32, #tpu.memory_space<vmem>>, %arg7: memref<256x128xbf16, #tpu.memory_space<vmem>>, %arg8: memref<256x128xbf16, #tpu.memory_space<vmem>>, %arg9: memref<1x128x4xf32, #tpu.memory_space<vmem>>, %arg10: memref<1x128x128xf32, #tpu.memory_space<vmem>>, %arg11: memref<128x4xf32, #tpu.memory_space<vmem>>, %arg12: memref<128x128xf32, #tpu.memory_space<vmem>>) attributes {dimension_semantics = [#tpu.dimension_semantics<parallel>, #tpu.dimension_semantics<arbitrary>], iteration_bounds = array<i64: 2, 2>, scalar_prefetch = 0 : i64, scratch_operands = 2 : i64, tpu.core_type = #tpu.core_type<tc>, window_params = [{pipeline_mode = #tpu.pipeline_mode<synchronous>, transform_indices = @transform_0, window_bounds = array<i64: 128, 128>}, {pipeline_mode = #tpu.pipeline_mode<synchronous>, transform_indices = @transform_1, window_bounds = array<i64: 128, 128>}, {pipeline_mode = #tpu.pipeline_mode<synchronous>, transform_indices = @transform_2, window_bounds = array<i64: 128, 1>}, {pipeline_mode = #tpu.pipeline_mode<synchronous>, transform_indices = @transform_3, window_bounds = array<i64: 128, 132>}, {pipeline_mode = #tpu.pipeline_mode<synchronous>, transform_indices = @transform_4, window_bounds = array<i64: 4, 128>}, {transform_indices = @transform_5, window_bounds = array<i64: 256, 128>}, {transform_indices = @transform_6, window_bounds = array<i64: 256, 128>}, {transform_indices = @transform_7, window_bounds = array<i64: 1, 128, 4>}, {transform_indices = @transform_8, window_bounds = array<i64: 1, 128, 128>}]} {
    %c0_i32 = arith.constant 0 : i32
    %0 = arith.cmpi eq, %arg1, %c0_i32 : i32
    %1 = arith.extui %0 : i1 to i32
    %c0_i32_0 = arith.constant 0 : i32
    %2 = arith.cmpi ne, %1, %c0_i32_0 : i32
    scf.if %2 {
      %cst_33 = arith.constant 0.000000e+00 : f32
      %45 = vector.broadcast %cst_33 : f32 to vector<128x4xf32>
      %c0_34 = arith.constant 0 : index
      %c0_35 = arith.constant 0 : index
      %46 = vector.load %arg11[%c0_34, %c0_35] : memref<128x4xf32, #tpu.memory_space<vmem>>, vector<128x4xf32>
      tpu.vector_store %arg11[%c0_34, %c0_35], %45 {strides = array<i32>} : memref<128x4xf32, #tpu.memory_space<vmem>>, vector<128x4xf32>,
      %cst_36 = arith.constant 0.000000e+00 : f32
      %47 = vector.broadcast %cst_36 : f32 to vector<128x128xf32>
      %c0_37 = arith.constant 0 : index
      %c0_38 = arith.constant 0 : index
      %48 = vector.load %arg12[%c0_37, %c0_38] : memref<128x128xf32, #tpu.memory_space<vmem>>, vector<128x128xf32>
      tpu.vector_store %arg12[%c0_37, %c0_38], %47 {strides = array<i32>} : memref<128x128xf32, #tpu.memory_space<vmem>>, vector<128x128xf32>,
    } else {
    }
    %c0 = arith.constant 0 : index
    %c0_1 = arith.constant 0 : index
    %3 = vector.load %arg7[%c0, %c0_1] : memref<256x128xbf16, #tpu.memory_space<vmem>>, vector<256x128xbf16>
    %c0_2 = arith.constant 0 : index
    %c0_3 = arith.constant 0 : index
    %4 = vector.load %arg8[%c0_2, %c0_3] : memref<256x128xbf16, #tpu.memory_space<vmem>>, vector<256x128xbf16>
    %c0_4 = arith.constant 0 : index
    %c0_5 = arith.constant 0 : index
    %5 = vector.load %arg2[%c0_4, %c0_5] : memref<128x128xbf16, #tpu.memory_space<vmem>>, vector<128x128xbf16>
    %cst = arith.constant dense<0.000000e+00> : vector<256x128xf32>
    %6 = tpu.matmul %3, %5, %cst {dimension_numbers = #tpu.dot_dimension_numbers<[1], [0], [0], [1], [0, 0, 1, 1], [], []>} : vector<256x128xbf16>, vector<128x128xbf16>, vector<256x128xf32> -> vector<256x128xf32>
    %c0_6 = arith.constant 0 : index
    %c0_7 = arith.constant 0 : index
    %7 = vector.load %arg3[%c0_6, %c0_7] : memref<128x128xbf16, #tpu.memory_space<vmem>>, vector<128x128xbf16>
    %cst_8 = arith.constant dense<0.000000e+00> : vector<256x128xf32>
    %8 = tpu.matmul %4, %7, %cst_8 {dimension_numbers = #tpu.dot_dimension_numbers<[1], [0], [0], [1], [0, 0, 1, 1], [], []>} : vector<256x128xbf16>, vector<128x128xbf16>, vector<256x128xf32> -> vector<256x128xf32>
    %c0_9 = arith.constant 0 : index
    %c0_10 = arith.constant 0 : index
    %9 = vector.load %arg4[%c0_9, %c0_10] : memref<128x1xbf16, #tpu.memory_space<vmem>>, vector<128x1xbf16>
    %cst_11 = arith.constant dense<0.000000e+00> : vector<256x1xf32>
    %10 = tpu.matmul %4, %9, %cst_11 {dimension_numbers = #tpu.dot_dimension_numbers<[1], [0], [0], [1], [0, 0, 1, 1], [], []>} : vector<256x128xbf16>, vector<128x1xbf16>, vector<256x1xf32> -> vector<256x1xf32>
    %11 = arith.addf %6, %8 : vector<256x128xf32>
    %cst_12 = arith.constant 0.000000e+00 : f32
    %12 = vector.broadcast %cst_12 : f32 to vector<256x128xf32>
    %13 = arith.cmpf oge, %11, %12 : vector<256x128xf32>
    %cst_13 = arith.constant 2.000000e-01 : f32
    %14 = vector.broadcast %cst_13 : f32 to vector<256x128xf32>
    %15 = arith.mulf %14, %11 : vector<256x128xf32>
    %16 = arith.select %13, %11, %15 : vector<256x128xi1>, vector<256x128xf32>
    %c0_14 = arith.constant 0 : index
    %c0_15 = arith.constant 0 : index
    %17 = vector.load %arg5[%c0_14, %c0_15] : memref<128x132xf32, #tpu.memory_space<vmem>>, vector<128x132xf32>
    %cst_16 = arith.constant dense<0.000000e+00> : vector<256x132xf32>
    %18 = tpu.matmul %16, %17, %cst_16 {dimension_numbers = #tpu.dot_dimension_numbers<[1], [0], [0], [1], [0, 0, 1, 1], [], []>} : vector<256x128xf32>, vector<128x132xf32>, vector<256x132xf32> -> vector<256x132xf32>
    %cst_17 = arith.constant 0.000000e+00 : f32
    %19 = vector.broadcast %cst_17 : f32 to vector<256x132xf32>
    %20 = arith.cmpf oge, %18, %19 : vector<256x132xf32>
    %cst_18 = arith.constant 2.000000e-01 : f32
    %21 = vector.broadcast %cst_18 : f32 to vector<256x132xf32>
    %22 = arith.mulf %21, %18 : vector<256x132xf32>
    %23 = arith.select %20, %18, %22 : vector<256x132xi1>, vector<256x132xf32>
    %24 = vector.extract_strided_slice %23 {offsets = [0, 0], sizes = [256, 128], strides = [1, 1]} : vector<256x132xf32> to vector<256x128xf32>
    %25 = vector.extract_strided_slice %23 {offsets = [0, 128], sizes = [256, 4], strides = [1, 1]} : vector<256x132xf32> to vector<256x4xf32>
    %26 = math.exp %25 : vector<256x4xf32>
    %27 = vector.broadcast %10 : vector<256x1xf32> to vector<256x4xf32>
    %28 = arith.mulf %27, %26 : vector<256x4xf32>
    %c0_19 = arith.constant 0 : index
    %c0_20 = arith.constant 0 : index
    %29 = vector.load %arg6[%c0_19, %c0_20] : memref<4x128xf32, #tpu.memory_space<vmem>>, vector<4x128xf32>
    %cst_21 = arith.constant dense<0.000000e+00> : vector<256x128xf32>
    %30 = tpu.matmul %28, %29, %cst_21 {dimension_numbers = #tpu.dot_dimension_numbers<[1], [0], [0], [1], [0, 0, 1, 1], [], []>} : vector<256x4xf32>, vector<4x128xf32>, vector<256x128xf32> -> vector<256x128xf32>
    %31 = arith.mulf %30, %24 : vector<256x128xf32>
    %32 = arith.truncf %31 : vector<256x128xf32> to vector<256x128xbf16>
    %33 = arith.truncf %28 : vector<256x4xf32> to vector<256x4xbf16>
    %c0_22 = arith.constant 0 : index
    %c0_23 = arith.constant 0 : index
    %34 = vector.load %arg12[%c0_22, %c0_23] : memref<128x128xf32, #tpu.memory_space<vmem>>, vector<128x128xf32>
    %cst_24 = arith.constant dense<0.000000e+00> : vector<128x128xf32>
    %35 = tpu.matmul %3, %32, %cst_24 {dimension_numbers = #tpu.dot_dimension_numbers<[0], [0], [1], [1], [0, 1, 1, 1], [], []>} : vector<256x128xbf16>, vector<256x128xbf16>, vector<128x128xf32> -> vector<128x128xf32>
    %36 = arith.addf %34, %35 : vector<128x128xf32>
    %c0_25 = arith.constant 0 : index
    %c0_26 = arith.constant 0 : index
    %37 = vector.load %arg12[%c0_25, %c0_26] : memref<128x128xf32, #tpu.memory_space<vmem>>, vector<128x128xf32>
    tpu.vector_store %arg12[%c0_25, %c0_26], %36 {strides = array<i32>} : memref<128x128xf32, #tpu.memory_space<vmem>>, vector<128x128xf32>,
    %c0_27 = arith.constant 0 : index
    %c0_28 = arith.constant 0 : index
    %38 = vector.load %arg11[%c0_27, %c0_28] : memref<128x4xf32, #tpu.memory_space<vmem>>, vector<128x4xf32>
    %cst_29 = arith.constant dense<0.000000e+00> : vector<128x4xf32>
    %39 = tpu.matmul %3, %33, %cst_29 {dimension_numbers = #tpu.dot_dimension_numbers<[0], [0], [1], [1], [0, 1, 1, 1], [], []>} : vector<256x128xbf16>, vector<256x4xbf16>, vector<128x4xf32> -> vector<128x4xf32>
    %40 = arith.addf %38, %39 : vector<128x4xf32>
    %c0_30 = arith.constant 0 : index
    %c0_31 = arith.constant 0 : index
    %41 = vector.load %arg11[%c0_30, %c0_31] : memref<128x4xf32, #tpu.memory_space<vmem>>, vector<128x4xf32>
    tpu.vector_store %arg11[%c0_30, %c0_31], %40 {strides = array<i32>} : memref<128x4xf32, #tpu.memory_space<vmem>>, vector<128x4xf32>,
    %c1_i32 = arith.constant 1 : i32
    %42 = arith.cmpi eq, %arg1, %c1_i32 : i32
    %43 = arith.extui %42 : i1 to i32
    %c0_i32_32 = arith.constant 0 : i32
    %44 = arith.cmpi ne, %43, %c0_i32_32 : i32
    scf.if %44 {
      %c0_33 = arith.constant 0 : index
      %c0_34 = arith.constant 0 : index
      %45 = vector.load %arg11[%c0_33, %c0_34] : memref<128x4xf32, #tpu.memory_space<vmem>>, vector<128x4xf32>
      %c0_35 = arith.constant 0 : index
      %c0_36 = arith.constant 0 : index
      %c0_37 = arith.constant 0 : index
      %46 = vector.load %arg9[%c0_35, %c0_36, %c0_37] : memref<1x128x4xf32, #tpu.memory_space<vmem>>, vector<1x128x4xf32>
      %47 = vector.shape_cast %46 : vector<1x128x4xf32> to vector<128x4xf32>
      %48 = vector.shape_cast %45 : vector<128x4xf32> to vector<1x128x4xf32>
      tpu.vector_store %arg9[%c0_35, %c0_36, %c0_37], %48 {strides = array<i32>} : memref<1x128x4xf32, #tpu.memory_space<vmem>>, vector<1x128x4xf32>,
      %c0_38 = arith.constant 0 : index
      %c0_39 = arith.constant 0 : index
      %49 = vector.load %arg12[%c0_38, %c0_39] : memref<128x128xf32, #tpu.memory_space<vmem>>, vector<128x128xf32>
      %c0_40 = arith.constant 0 : index
      %c0_41 = arith.constant 0 : index
      %c0_42 = arith.constant 0 : index
      %50 = vector.load %arg10[%c0_40, %c0_41, %c0_42] : memref<1x128x128xf32, #tpu.memory_space<vmem>>, vector<1x128x128xf32>
      %51 = vector.shape_cast %50 : vector<1x128x128xf32> to vector<128x128xf32>
      %52 = vector.shape_cast %49 : vector<128x128xf32> to vector<1x128x128xf32>
      tpu.vector_store %arg10[%c0_40, %c0_41, %c0_42], %52 {strides = array<i32>} : memref<1x128x128xf32, #tpu.memory_space<vmem>>, vector<1x128x128xf32>,
    } else {
    }
    return
  }
  func.func @transform_0(%arg0: i32, %arg1: i32) -> (i32, i32) {
    %c0_i32 = arith.constant 0 : i32
    %c0_i32_0 = arith.constant 0 : i32
    %c0_i32_1 = arith.constant 0 : i32
    return %c0_i32, %c0_i32_0 : i32, i32
  }
  func.func @transform_1(%arg0: i32, %arg1: i32) -> (i32, i32) {
    %c0_i32 = arith.constant 0 : i32
    %c0_i32_0 = arith.constant 0 : i32
    %c0_i32_1 = arith.constant 0 : i32
    return %c0_i32, %c0_i32_0 : i32, i32
  }
  func.func @transform_2(%arg0: i32, %arg1: i32) -> (i32, i32) {
    %c0_i32 = arith.constant 0 : i32
    %c0_i32_0 = arith.constant 0 : i32
    %c0_i32_1 = arith.constant 0 : i32
    return %c0_i32, %c0_i32_0 : i32, i32
  }
  func.func @transform_3(%arg0: i32, %arg1: i32) -> (i32, i32) {
    %c0_i32 = arith.constant 0 : i32
    %c0_i32_0 = arith.constant 0 : i32
    %c0_i32_1 = arith.constant 0 : i32
    return %c0_i32, %c0_i32_0 : i32, i32
  }
  func.func @transform_4(%arg0: i32, %arg1: i32) -> (i32, i32) {
    %c0_i32 = arith.constant 0 : i32
    %c0_i32_0 = arith.constant 0 : i32
    %c0_i32_1 = arith.constant 0 : i32
    return %c0_i32, %c0_i32_0 : i32, i32
  }
  func.func @transform_5(%arg0: i32, %arg1: i32) -> (i32, i32) {
    %c2_i32 = arith.constant 2 : i32
    %0 = arith.muli %arg0, %c2_i32 : i32
    %1 = arith.addi %0, %arg1 : i32
    %c0_i32 = arith.constant 0 : i32
    %c0_i32_0 = arith.constant 0 : i32
    return %1, %c0_i32 : i32, i32
  }
  func.func @transform_6(%arg0: i32, %arg1: i32) -> (i32, i32) {
    %c2_i32 = arith.constant 2 : i32
    %0 = arith.muli %arg0, %c2_i32 : i32
    %1 = arith.addi %0, %arg1 : i32
    %c0_i32 = arith.constant 0 : i32
    %c0_i32_0 = arith.constant 0 : i32
    return %1, %c0_i32 : i32, i32
  }
  func.func @transform_7(%arg0: i32, %arg1: i32) -> (i32, i32, i32) {
    %c0_i32 = arith.constant 0 : i32
    %c0_i32_0 = arith.constant 0 : i32
    %c0_i32_1 = arith.constant 0 : i32
    return %arg0, %c0_i32, %c0_i32_0 : i32, i32, i32
  }
  func.func @transform_8(%arg0: i32, %arg1: i32) -> (i32, i32, i32) {
    %c0_i32 = arith.constant 0 : i32
    %c0_i32_0 = arith.constant 0 : i32
    %c0_i32_1 = arith.constant 0 : i32
    return %arg0, %c0_i32, %c0_i32_0 : i32, i32, i32
  }
}

</mosaic_0001>

<bundles_post_ra>
// kernel: tpu_custom_call.1
= control target key start
LH: loop header
LB: loop body
LE: loop exit
PB: predicated region body
PF: predicated region fallthrough
CT: control target
= control target key end

     0   :  { %s5507_s0 = inlined_call_operand.vmem [shape: bf16[128,128], index: 0, kind: input, shape index: {}]   ;;  %s5508_s1 = inlined_call_operand.vmem [shape: bf16[128,128], index: 1, kind: input, shape index: {}]   ;;  %s5509_s2 = inlined_call_operand.vmem [shape: bf16[128,1], index: 2, kind: input, shape index: {}]   ;;  %s5510_s3 = inlined_call_operand.vmem [shape: f32[128,132], index: 3, kind: input, shape index: {}]   ;;  %s5511_s4 = inlined_call_operand.vmem [shape: f32[4,128], index: 4, kind: input, shape index: {}]   ;;  %s5512_s5 = inlined_call_operand.hbm [shape: bf16[1024,128], index: 5, kind: input, shape index: {}]   ;;  %s5513_s6 = inlined_call_operand.hbm [shape: bf16[1024,128], index: 6, kind: input, shape index: {}]   ;;  %s5514_s7 = inlined_call_operand.vmem [shape: f32[2,128,4], index: 7, kind: output, shape index: {0}]   ;;  %s5515_s8 = inlined_call_operand.hbm [shape: f32[2,128,128], index: 8, kind: output, shape index: {1}]  }
   0x1   :  { %5527 = sst [smem:[#allocation20_spill]] %s5510_s3 }
   0x2   :  { %5528 = sst [smem:[#allocation21_spill]] %s5511_s4 }
   0x3   :  { %5529 = sst [smem:[#allocation22_spill]] %s5512_s5 }
   0x4   :  { %5530 = sst [smem:[#allocation23_spill]] %s5515_s8 }
   0x5   :  { %14 = vsyncpa [#allocation5], 0 }
   0x6   :  { %16 = vsyncpa [#allocation5 + $0x1], 0 }
   0x7   :  { %17 = vsyncpa [#allocation8], 0 }
   0x8   :  { %19 = vsyncpa [#allocation8 + $0x1], 0 }
   0x9   :  { %20 = vsyncpa [#allocation6], 0 }
   0xa   :  { %22 = vsyncpa [#allocation6 + $0x1], 0  ;;  %s4240_s27 = smov 0   ;;  %s4242_s28 = smov 0  }
   0xb   :  { %s4244_s29 = smov 0   ;;  %s4246_s30 = smov 0  }
   0xc   :  { %s4248_s9 = smov 0   ;;  %s4250_s10 = smov 0  }
   0xd   :  { %s4252_s11 = smov 0   ;;  %s4254_s12 = smov 0  }
   0xe   :  { %s4256_s13 = smov 0   ;;  %s4258_s14 = smov 0  }
   0xf   :  { %s4260_s15 = smov 0  }
  0x10 LB: > { %5531 = sst [smem:[#allocation13_spill]] %s4163_s10  ;;  %s3148_s16 = sadd.s32 4294967295, %s4183_s15   ;;  %s4183_s15 = sphi %s4260_s15, %s28_s15   ;;  %s4179_s14 = sphi %s4258_s14, %s5564_s14   ;;  %s4175_s13 = sphi %s4256_s13, %s5563_s13   ;;  %s4171_s12 = sphi %s4254_s12, %s5562_s12   ;;  %s4167_s11 = sphi %s4252_s11, %s5561_s11   ;;  %s4163_s10 = sphi %s4250_s10, %s5560_s10   ;;  %s4159_s9 = sphi %s4248_s9, %s5569_s9   ;;  %s4155_s30 = sphi %s4246_s30, %s5568_s30   ;;  %s4151_s29 = sphi %s4244_s29, %s5567_s29   ;;  %s4147_s28 = sphi %s4242_s28, %s5566_s28   ;;  %s4143_s27 = sphi %s4240_s27, %s5565_s27  }
  0x11   : > { %5532 = sst [smem:[#allocation14_spill]] %s4175_s13  ;;  %s37_s18 = sadd.s32 1, %s4175_s13 }
  0x12   : > { %5533 = sst [smem:[#allocation15_spill]] %s4179_s14  ;;  %s40_s19 = sadd.s32 1, %s4179_s14 }
  0x13   : > { %p38_p0 = scmp.ge.s32.totalorder %s37_s18, 2  ;;  %s3150_s20 = sshll.u32 %s4179_s14, 1 }
  0x14   : > { %s4299_s21 = sadd.s32 %s4175_s13, %s3150_s20  ;;  %s156_s22 = sadd.s32 1, %s4163_s10 }
  0x15   : > { %s5571_s18 = smov (%p38_p0, %s37_s18), 0  ;;  %s5573_s19 = smov (!%p38_p0, %s40_s19), %s4179_s14 }
  0x16   : > { %5534 = sst [smem:[#allocation16_spill]] %s5571_s18  ;;  %p163_p1 = scmp.ne.s32.totalorder %s4163_s10, %s4159_s9 }
  0x17   : > { %p164_p2 = scmp.eq.s32.totalorder %s4183_s15, 0  ;;  %p42_p3 = scmp.ge.s32.totalorder %s5573_s19, 2 }
  0x18   : > { %p169_p4 = scmp.ne.s32.totalorder %s4159_s9, %s4155_s30  ;;  %p170_p6 = scmp.eq.s32.totalorder %s3148_s16, 0 }
  0x19   : > { %p4309_p5 = por %p164_p2, %p163_p1  ;;  %s5575_s19 = smov (%p42_p3, %s5573_s19), 0 }
  0x1a   : > { %5536 = sst [smem:[#allocation17_spill]] %s5575_s19  ;;  %p4315_p7 = por %p170_p6, %p169_p4 }
  0x1b   : > { %s238_s25 = sadd.s32 1, %s4151_s29  ;;  %s3151_s26 = sshll.u32 %s5575_s19, 1 }
  0x1c   : > { %s5537_s24 = scalar_select %p4315_p7, 1, 0 }
  0x1d   : > { %s235_s30 = ssub.s32 %s4179_s14, %s5575_s19  ;;  %s152_s20 = sadd.s32 %s3151_s26, %s5571_s18 }
  0x1e   : > { %p236_p8 = scmp.eq.s32.totalorder %s235_s30, 0  ;;  %s153_s17 = ssub.s32 %s4299_s21, %s152_s20 }
  0x1f   : > { %p248_p9 = scmp.ne.s32.totalorder %s4151_s29, %s4147_s28  ;;  %p154_p10 = scmp.eq.s32.totalorder %s153_s17, 0 }
  0x20   : > { %p249_p11 = scmp.eq.s32.totalorder %s3148_s16, 3  ;;  %p254_p13 = scmp.ne.s32.totalorder %s4147_s28, %s4143_s27 }
  0x21   : > { %s4328_s13 = scalar_select %p236_p8, %s4151_s29, %s238_s25  }
  0x22   : > { %s4331_s8 = scalar_select %p154_p10, %s4163_s10, %s156_s22  }
  0x23   : > { %5538 = sst [smem:[#allocation18_spill]] %s4328_s13  ;;  %p4333_p12 = por %p249_p11, %p248_p9 }
  0x24   : > { %5539 = sst [smem:[#allocation19_spill]] %s4331_s8  ;;  %s5541_s3 = sadd.s32 4294967294, %s4183_s15  }
  0x25   : > { %s5540_s4 = scalar_select %p4333_p12, 1, 0 }
  0x26   : > { %p255_p0 = scmp.eq.s32.totalorder %s5541_s3, 3  ;;  %p3778_p1 = scmp.lt.s32.totalorder %s4183_s15, 4 }
  0x27   : > { %s4343_s26 = sand.u32 1, %s4163_s10   ;;  %s5523_s22 = sshll.u32 %s4299_s21, 11 }
  0x28   : > { %p4345_p2 = por %p255_p0, %p254_p13  ;;  %s5522_s16 = sshll.u32 %s4343_s26, 7 }
  0x29   : > { %s5543_s5 = sld [smem:[#allocation22_spill]]  ;;  %s294_s3 = scalar_lea.vmem [#allocation4], %s5522_s16 }
  0x2a   : > { %s5542_s17 = scalar_select %p4345_p2, 1, 0 }
  0x2b   : > { %s303_s19 = sshll.u32 %s294_s3, 4  ;;  %p4362_p3 = pnand %p3778_p1, %p4309_p5  ;;  %s4366_s19 = int_to_ptr.vmem [resolvable:$true] %s303_s19 }
  0x2d   : > { %p3999_p6 = pneg %p4362_p3 }
  0x2f   : > { %s4356_s20 = scalar_lea.hbm %s5543_s5, %s5523_s22  ;;  %s4002_s23 = scalar_lea.hbm %s5543_s5, 8192 }
  0x30   : > { %s3997_s25 = scalar_lea.hbm %s4356_s20, 2048  ;;  %p4003_p5 = scmp.lt.u32.totalorder %s4356_s20, %s5543_s5 }
  0x31   : > { %p3998_p4 = scmp.ne.s32.totalorder %s4356_s20, %s3997_s25  ;;  %p4004_p10 = scmp.lt.u32.totalorder %s4002_s23, %s3997_s25 }
  0x32   : > { %p4006_p13 = scmp.lt.u32.totalorder %s3997_s25, %s4356_s20 }
  0x33   : > { %p4000_p8 = pnand %p3999_p6, %p3998_p4  ;;  %p4005_p11 = por %p4004_p10, %p4003_p5 }
  0x35   : > { %p4001_p9 = pneg %p4000_p8  ;;  %p4007_p0 = por %p4006_p13, %p4005_p11 }
  0x37   : > { %p4008_p1 = pnand %p4007_p0, %p4001_p9 }
  0x39   : > { %4011 = shalt.err (!%p4008_p1)
}
  0x3a   : > { %s4012_s14 = scalar_lea.vmem %s4366_s19, 2048  ;;  %s4185_s30 = smov [#allocation4]  }
  0x3b   : > { %p4013_p4 = scmp.ne.s32.totalorder %s4366_s19, %s4012_s14  ;;  %s4017_s3 = sshll.u32 %s4185_s30, 4  ;;  %s4018_s3 = int_to_ptr.vmem [resolvable:$false] %s4017_s3 }
  0x3c   : > { %s4019_s16 = scalar_lea.vmem %s4018_s3, 4096  ;;  %p4020_p12 = scmp.lt.s32.totalorder %s4366_s19, %s4018_s3 }
  0x3d   : > { %p4015_p8 = pnand %p4013_p4, %p3999_p6  ;;  %p4021_p5 = scmp.lt.s32.totalorder %s4019_s16, %s4012_s14 }
  0x3f   : > { %p4016_p2 = pneg %p4015_p8  ;;  %p4022_p10 = por %p4021_p5, %p4020_p12 }
  0x41   : > { %p4023_p11 = pnand %p4022_p10, %p4016_p2 }
  0x43   : > { %4026 = shalt.err (!%p4023_p11)
}
  0x44   : > { %s4186_s22 = smov 64   ;;  %s4187_s25 = smov 4  }
  0x45   : > { %s5545_s14 = scalar_lea.sflag [#allocation5], %s4343_s26  ;;  %p3164_p12 = scmp.ge.s32.totalorder %s4183_s15, 1 }
  0x46   : > { %3770 = dma.hbm_to_vmem [thread:$0]  (!%p4362_p3), %s4356_s20, 2048, %s4366_s19, %s5545_s14, %s4186_s22, %s4186_s22, %s4187_s25  }
  0x47   : > { %p334_p2 = scmp.lt.s32.totalorder %s4183_s15, 5  ;;  %s5547_s30 = sshll.u32 %s4299_s21, 11 }
  0x48   : > { %s4410_s5 = scalar_lea.hbm %s5513_s6, %s5547_s30  ;;  %s5548_s8 = sshll.u32 %s4343_s26, 7 }
  0x49   : > { %p4401_p9 = pnand %p3164_p12, %p334_p2  ;;  %s317_s10 = scalar_lea.vmem [#allocation7], %s5548_s8 }
  0x4a   : > { %s326_s13 = sshll.u32 %s317_s10, 4  ;;  %s314_s19 = scalar_lea.sflag [#allocation8], %s4343_s26  ;;  %s4414_s13 = int_to_ptr.vmem [resolvable:$true] %s326_s13 }
  0x4b   : > { %s4027_s20 = scalar_lea.hbm %s4410_s5, 2048  ;;  %s4032_s30 = scalar_lea.hbm %s5513_s6, 8192 }
  0x4c   : > { %p4028_p13 = scmp.ne.s32.totalorder %s4410_s5, %s4027_s20  ;;  %p4033_p4 = scmp.lt.u32.totalorder %s4410_s5, %s5513_s6 }
  0x4d   : > { %p4034_p8 = scmp.lt.u32.totalorder %s4032_s30, %s4027_s20  ;;  %p4036_p10 = scmp.lt.u32.totalorder %s4027_s20, %s4410_s5 }
  0x4e   : > { %p4030_p0 = pnand %p4028_p13, %p3999_p6 }
  0x4f   : > { %p4035_p5 = por %p4034_p8, %p4033_p4 }
  0x50   : > { %p4031_p1 = pneg %p4030_p0 }
  0x51   : > { %p4037_p11 = por %p4036_p10, %p4035_p5 }
  0x53   : > { %p4038_p12 = pnand %p4037_p11, %p4031_p1 }
  0x55   : > { %4041 = shalt.err (!%p4038_p12)
}
  0x56   : > { %s4042_s8 = scalar_lea.vmem %s4414_s13, 2048  ;;  %s4188_s10 = smov [#allocation7]  }
  0x57   : > { %p4043_p2 = scmp.ne.s32.totalorder %s4414_s13, %s4042_s8  ;;  %s4047_s21 = sshll.u32 %s4188_s10, 4  ;;  %s4048_s21 = int_to_ptr.vmem [resolvable:$false] %s4047_s21 }
  0x58   : > { %s4049_s14 = scalar_lea.vmem %s4048_s21, 4096  ;;  %p4050_p7 = scmp.lt.s32.totalorder %s4414_s13, %s4048_s21 }
  0x59   : > { %p4045_p13 = pnand %p4043_p2, %p3999_p6  ;;  %p4051_p4 = scmp.lt.s32.totalorder %s4049_s14, %s4042_s8 }
  0x5b   : > { %p4046_p0 = pneg %p4045_p13  ;;  %p4052_p8 = por %p4051_p4, %p4050_p7 }
  0x5d   : > { %p4053_p5 = pnand %p4052_p8, %p4046_p0 }
  0x5f   : > { %4056 = shalt.err (!%p4053_p5)
}
  0x60   : > { %3773 = dma.hbm_to_vmem [thread:$0]  (!%p4362_p3), %s4410_s5, 2048, %s4414_s13, %s314_s19, %s4186_s22, %s4186_s22, %s4187_s25  }
  0x61   : > { %338 = sbr.rel (%p4401_p9) target bundleno = 1327 (0x52f), region = 48  ;;  %s340_s20 = sand.u32 (!%p4401_p9), 1, %s4159_s9  }
  0x62   : > { %s3165_s30 = sshll.u32 (!%p4401_p9), %s340_s20, 7  ;;  %s341_s3 = scalar_lea.sflag (!%p4401_p9), [#allocation5], %s340_s20 }
  0x63   : > { %s4448_s16 = scalar_lea.vmem (!%p4401_p9), [#allocation4], %s3165_s30  ;;  %p5549_p7 = scmp.ne.s32.totalorder (!%p4401_p9), %s5537_s24, 0 }
  0x68   : > { %4130 = dma.done.wait (%p5549_p7), %s341_s3, 2048  }
  0x69   : > { %4132 = vsyncadd (%p5549_p7), %s341_s3, 4294965248  ;;  %s350_s18 = scalar_lea.sflag [#allocation8], %s340_s20  ;;  %s4454_s26 = scalar_lea.vmem [#allocation7], %s3165_s30 }
  0x6a   : > { %4134 = dma.done.wait (%p5549_p7), %s350_s18, 2048  }
  0x6b   : > { %4136 = vsyncadd (%p5549_p7), %s350_s18, 4294965248  ;;  %s393_s5 = sand.u32 1, %s4147_s28   ;;  %p402_p3 = scmp.lt.s32.totalorder %s4171_s12, 1 }
  0x6c   : > { %s3167_s13 = sshll.u32 %s393_s5, 7  ;;  %p3170_p6 = scmp.ne.s32.totalorder %s4167_s11, 0 }
  0x6d   : > { %s403_s22 = scalar_select %p402_p3, %s4171_s12, 1 }
  0x6e   : > { %s4470_s10 = scalar_lea.vmem [#allocation9], %s3167_s13  ;;  %411 = sbr.rel (%p3170_p6) target bundleno = 127 (0x7f), region = 60  ;;  %vm412_vm0 = vcmask (!%p3170_p6), 31744   ;;  %v4189_v0 = vmov (!%p3170_p6), 0.0  }
  0x6f   : > { %s3268_s25 = sshll.u32 %s403_s22, 7  ;;  %413 = vst.msk [vmem:[#allocation2] sm:$0xff] (!%p3170_p6), %vm412_vm0, %v4189_v0  ;;  %414 = vst.msk [vmem:[#allocation2 + $0x8] sm:$0xff] (!%p3170_p6), %vm412_vm0, %v4189_v0 }
  0x70   : > { %s4468_s8 = scalar_lea.vmem %s5514_s7, %s3268_s25  ;;  %415 = vst.msk [vmem:[#allocation2 + $0x10] sm:$0xff] (!%p3170_p6), %vm412_vm0, %v4189_v0  ;;  %416 = vst.msk [vmem:[#allocation2 + $0x18] sm:$0xff] (!%p3170_p6), %vm412_vm0, %v4189_v0 }
  0x71   : > { %417 = vst.msk [vmem:[#allocation2 + $0x20] sm:$0xff] (!%p3170_p6), %vm412_vm0, %v4189_v0  ;;  %418 = vst.msk [vmem:[#allocation2 + $0x28] sm:$0xff] (!%p3170_p6), %vm412_vm0, %v4189_v0 }
  0x72   : > { %419 = vst.msk [vmem:[#allocation2 + $0x30] sm:$0xff] (!%p3170_p6), %vm412_vm0, %v4189_v0  ;;  %420 = vst.msk [vmem:[#allocation2 + $0x38] sm:$0xff] (!%p3170_p6), %vm412_vm0, %v4189_v0 }
  0x73   : > { %421 = vst.msk [vmem:[#allocation2 + $0x40] sm:$0xff] (!%p3170_p6), %vm412_vm0, %v4189_v0  ;;  %422 = vst.msk [vmem:[#allocation2 + $0x48] sm:$0xff] (!%p3170_p6), %vm412_vm0, %v4189_v0 }
  0x74   : > { %423 = vst.msk [vmem:[#allocation2 + $0x50] sm:$0xff] (!%p3170_p6), %vm412_vm0, %v4189_v0  ;;  %424 = vst.msk [vmem:[#allocation2 + $0x58] sm:$0xff] (!%p3170_p6), %vm412_vm0, %v4189_v0 }
  0x75   : > { %425 = vst.msk [vmem:[#allocation2 + $0x60] sm:$0xff] %vm412_vm0, %v4189_v0  ;;  %426 = vst.msk [vmem:[#allocation2 + $0x68] sm:$0xff] %vm412_vm0, %v4189_v0 }
  0x76   : > { %427 = vst.msk [vmem:[#allocation2 + $0x70] sm:$0xff] %vm412_vm0, %v4189_v0  ;;  %428 = vst.msk [vmem:[#allocation2 + $0x78] sm:$0xff] %vm412_vm0, %v4189_v0 }
  0x77   : > { %429 = vst [vmem:[#allocation3] sm:$0xff] %v4189_v0  ;;  %430 = vst [vmem:[#allocation3 + $0x8] sm:$0xff] %v4189_v0 }
  0x78   : > { %431 = vst [vmem:[#allocation3 + $0x10] sm:$0xff] %v4189_v0  ;;  %432 = vst [vmem:[#allocation3 + $0x18] sm:$0xff] %v4189_v0 }
  0x79   : > { %433 = vst [vmem:[#allocation3 + $0x20] sm:$0xff] %v4189_v0  ;;  %434 = vst [vmem:[#allocation3 + $0x28] sm:$0xff] %v4189_v0 }
  0x7a   : > { %435 = vst [vmem:[#allocation3 + $0x30] sm:$0xff] %v4189_v0  ;;  %436 = vst [vmem:[#allocation3 + $0x38] sm:$0xff] %v4189_v0 }
  0x7b   : > { %437 = vst [vmem:[#allocation3 + $0x40] sm:$0xff] %v4189_v0  ;;  %438 = vst [vmem:[#allocation3 + $0x48] sm:$0xff] %v4189_v0 }
  0x7c   : > { %439 = vst [vmem:[#allocation3 + $0x50] sm:$0xff] %v4189_v0  ;;  %440 = vst [vmem:[#allocation3 + $0x58] sm:$0xff] %v4189_v0 }
  0x7d   : > { %441 = vst [vmem:[#allocation3 + $0x60] sm:$0xff] %v4189_v0  ;;  %442 = vst [vmem:[#allocation3 + $0x68] sm:$0xff] %v4189_v0 }
  0x7e   : > { %443 = vst [vmem:[#allocation3 + $0x70] sm:$0xff] %v4189_v0  ;;  %444 = vst [vmem:[#allocation3 + $0x78] sm:$0xff] %v4189_v0 }
  0x7f PF: > { %v3877_v1 = vld [vmem:[%s5508_s1] sm:$0xff]   ;;  %v3878_v2 = vld [vmem:[%s5508_s1 + $0x8] sm:$0xff]   ;;  %v3879_v3 = vld [vmem:[%s5508_s1 + $0x10] sm:$0xff]   ;;  %s5550_s14 = sld [smem:[#allocation20_spill]]  ;;  %s5552_s25 = sld [smem:[#allocation21_spill]] }
  0x80   : > { %3503 = vmatprep.subr.bf16.mxu0 %v3877_v1  ;;  %v3880_v4 = vld [vmem:[%s5508_s1 + $0x18] sm:$0xff]   ;;  %v3885_v5 = vld [vmem:[%s4454_s26] sm:$0xff]   ;;  %v3882_v7 = vld [vmem:[%s5508_s1 + $0x28] sm:$0xff]   ;;  %p3260_p9 = scmp.ne.s32.totalorder %s4167_s11, 1 }
  0x81   : > { %3504 = vmatpush3.bf16.msra.mxu0 %v3877_v1  ;;  %3519 = vmatprep.mubr.bf16.mxu0 %v3885_v5  ;;  %v3881_v6 = vld [vmem:[%s5508_s1 + $0x20] sm:$0xff]   ;;  %v3883_v8 = vld [vmem:[%s5508_s1 + $0x30] sm:$0xff]   ;;  %v3884_v9 = vld [vmem:[%s5508_s1 + $0x38] sm:$0xff]  }
  0x82   : > { %3505 = vmatprep.subr.bf16.mxu0 %v3878_v2  ;;  %3567 = vmatprep.mubr.bf16.mxu1 %v3885_v5  ;;  %v3887_v10 = vld [vmem:[%s5507_s0] sm:$0xff]   ;;  %v4518_v11 = vld [vmem:[%s4454_s26 + $0x8] sm:$0xff]   ;;  %v4521_v12 = vld [vmem:[%s4454_s26 + $0x10] sm:$0xff]  }
  0x83   : > { %v3890_v13 = vld [vmem:[%s5507_s0 + $0x8] sm:$0xff]   ;;  %v3893_v14 = vld [vmem:[%s5507_s0 + $0x10] sm:$0xff]   ;;  %v4532_v15 = vld [vmem:[%s4454_s26 + $0x18] sm:$0xff]  }
  0x84   : > { %v4535_v16 = vld [vmem:[%s4454_s26 + $0x20] sm:$0xff]   ;;  %v3896_v17 = vld [vmem:[%s5507_s0 + $0x18] sm:$0xff]   ;;  %v4549_v20 = vld [vmem:[%s4454_s26 + $0x28] sm:$0xff]  }
  0x85   : > { %3506 = vmatpush3.bf16.msra.mxu0 %v3878_v2  ;;  %v3899_v18 = vld [vmem:[%s5507_s0 + $0x20] sm:$0xff]   ;;  %v3923_v21 = vld [vmem:[%s5509_s2 + $0x8] sm:$0xff]   ;;  %v4555_v22 = vld [vmem:[%s4454_s26 + $0x30] sm:$0xff]   ;;  %s5551_s20 = smov %s5550_s14 }
  0x86   : > { %3507 = vmatprep.subr.bf16.mxu0 %v3879_v3  ;;  %v3921_v19 = vld [vmem:[%s5509_s2] sm:$0xff]   ;;  %v3902_v23 = vld [vmem:[%s5507_s0 + $0x28] sm:$0xff]   ;;  %v3925_v24 = vld [vmem:[%s5509_s2 + $0x10] sm:$0xff]  }
  0x87   : > { %3551 = vmatprep.subr.bf16.mxu1 %v3921_v19  ;;  %v3905_v25 = vld [vmem:[%s5507_s0 + $0x30] sm:$0xff]   ;;  %v3927_v26 = vld [vmem:[%s5509_s2 + $0x18] sm:$0xff]   ;;  %v4575_v28 = vld [vmem:[%s4454_s26 + $0x40] sm:$0xff]  }
  0x88   : > { %3552 = vmatpush3.bf16.msra.mxu1 %v3921_v19  ;;  %v4572_v27 = vld [vmem:[%s4454_s26 + $0x38] sm:$0xff]   ;;  %v3929_v30 = vld [vmem:[%s5509_s2 + $0x20] sm:$0xff]   ;;  %v3930_v31 = vld [vmem:[%s5509_s2 + $0x28] sm:$0xff]  }
  0x89   : > { %3508 = vmatpush3.bf16.msra.mxu0 %v3879_v3  ;;  %3553 = vmatprep.subr.bf16.mxu1 %v3923_v21  ;;  %v3908_v29 = vld [vmem:[%s5507_s0 + $0x38] sm:$0xff]   ;;  %v4589_v32 = vld [vmem:[%s4454_s26 + $0x48] sm:$0xff]   ;;  %v4592_v33 = vld [vmem:[%s4454_s26 + $0x50] sm:$0xff]  }
  0x8a   : > { %3509 = vmatprep.subr.bf16.mxu0 %v3880_v4  ;;  %v3931_v34 = vld [vmem:[%s5509_s2 + $0x30] sm:$0xff]   ;;  %v3932_v35 = vld [vmem:[%s5509_s2 + $0x38] sm:$0xff]   ;;  %v1473_v37 = vld [vmem:[%s5550_s14 + $0x8] sm:$0xff] }
  0x8b   : > { %v4603_v36 = vld [vmem:[%s4454_s26 + $0x58] sm:$0xff]   ;;  %v4612_v39 = vld [vmem:[%s4454_s26 + $0x60] sm:$0xff]   ;;  %v1474_v42 = vld [vmem:[%s5551_s20 + $0x10] sm:$0xff] }
  0x8c   : > { %3554 = vmatpush3.bf16.msra.mxu1 %v3923_v21  ;;  %v1475_v38 = vld [vmem:[%s5551_s20 + $0x18] sm:$0xff]  ;;  %v1472_v41 = vld [vmem:[%s5551_s20] sm:$0xff]  ;;  %v1477_v43 = vld [vmem:[%s5551_s20 + $0x28] sm:$0xff] }
  0x8d   : > { %3510 = vmatpush3.bf16.msra.mxu0 %v3880_v4  ;;  %3555 = vmatprep.subr.bf16.mxu1 %v3925_v24  ;;  %v3697_v40 = vpack.c.bf16 %v1475_v38, %v1473_v37  ;;  %v1479_v44 = vld [vmem:[%s5551_s20 + $0x38] sm:$0xff]  ;;  %v3699_v45 = vpack.c.bf16 %v1474_v42, %v1472_v41  ;;  %v1476_v47 = vld [vmem:[%s5551_s20 + $0x20] sm:$0xff]  ;;  %v1478_v48 = vld [vmem:[%s5551_s20 + $0x30] sm:$0xff]  ;;  %v4190_v41 = vmov 0.0   ;;  %v4191_v42 = vmov 0  }
  0x8e   : > { %3511 = vmatprep.subr.bf16.mxu0 %v3881_v6  ;;  %v3701_v46 = vpack.c.bf16 %v1479_v44, %v1477_v43  ;;  %v4635_v49 = vld [vmem:[%s4454_s26 + $0x68] sm:$0xff]   ;;  %v1483_v51 = vld [vmem:[%s5551_s20 + $0x58] sm:$0xff]  ;;  %v4644_v52 = vld [vmem:[%s4454_s26 + $0x70] sm:$0xff]   ;;  %v3703_v53 = vpack.c.bf16 %v1478_v48, %v1476_v47  ;;  %3875 = vset.pattern.permute.xlu0 %v4191_v42 }
  0x8f   : > { %v1481_v50 = vld [vmem:[%s5551_s20 + $0x48] sm:$0xff]  ;;  %v1480_v55 = vld [vmem:[%s5551_s20 + $0x40] sm:$0xff]  ;;  %v1482_v56 = vld [vmem:[%s5551_s20 + $0x50] sm:$0xff]  ;;  %3876 = vset.pattern.permute.xlu1 %v4191_v42 }
  0x90   : > { %3556 = vmatpush3.bf16.msra.mxu1 %v3925_v24  ;;  %v3705_v54 = vpack.c.bf16 %v1483_v51, %v1481_v50  ;;  %v1485_v57 = vld [vmem:[%s5551_s20 + $0x68] sm:$0xff]  ;;  %v1487_v58 = vld [vmem:[%s5551_s20 + $0x78] sm:$0xff]  ;;  %v3707_v59 = vpack.c.bf16 %v1482_v56, %v1480_v55  ;;  %v1484_v61 = vld [vmem:[%s5551_s20 + $0x60] sm:$0xff] }
  0x91   : > { %3512 = vmatpush3.bf16.msra.mxu0 %v3881_v6  ;;  %3557 = vmatprep.subr.bf16.mxu1 %v3927_v26  ;;  %v3709_v60 = vpack.c.bf16 %v1487_v58, %v1485_v57  ;;  %v1486_v62 = vld [vmem:[%s5551_s20 + $0x70] sm:$0xff]  ;;  %v4669_v63 = vld [vmem:[%s4454_s26 + $0x78] sm:$0xff]   ;;  %v1489_v0 = vld [vmem:[%s5551_s20 + $0x88] sm:$0xff] }
  0x92   : > { %3513 = vmatprep.subr.bf16.mxu0 %v3882_v7  ;;  %v1491_v1 = vld [vmem:[%s5551_s20 + $0x98] sm:$0xff]  ;;  %v4678_v2 = vld [vmem:[%s4448_s16] sm:$0xff]   ;;  %v3711_v3 = vpack.c.bf16 %v1486_v62, %v1484_v61  ;;  %v1490_v6 = vld [vmem:[%s5551_s20 + $0x90] sm:$0xff] }
  0x93   : > { %v3713_v4 = vpack.c.bf16 %v1491_v1, %v1489_v0  ;;  %v1488_v5 = vld [vmem:[%s5551_s20 + $0x80] sm:$0xff]  ;;  %v1498_v21 = vld [vmem:[%s5551_s20 + $0xd0] sm:$0xff]  ;;  %v4735_v24 = vld [vmem:[%s4448_s16 + $0x28] sm:$0xff]  }
  0x94   : > { %3558 = vmatpush3.bf16.msra.mxu1 %v3927_v26  ;;  %v1496_v19 = vld [vmem:[%s5551_s20 + $0xc0] sm:$0xff]  ;;  %v4745_v26 = vld [vmem:[%s4448_s16 + $0x38] sm:$0xff]  }
  0x95   : > { %3514 = vmatpush3.bf16.msra.mxu0 %v3882_v7  ;;  %3559 = vmatprep.subr.bf16.mxu1 %v3929_v30  ;;  %v1493_v7 = vld [vmem:[%s5551_s20 + $0xa8] sm:$0xff]  ;;  %v1500_v38 = vld [vmem:[%s5551_s20 + $0xe0] sm:$0xff] }
  0x96   : > { %3515 = vmatprep.subr.bf16.mxu0 %v3883_v8 }
  0x98   : > { %3560 = vmatpush3.bf16.msra.mxu1 %v3929_v30  ;;  %v4765_v30 = vld [vmem:[%s4448_s16 + $0x58] sm:$0xff]  }
  0x99   : > { %3516 = vmatpush3.bf16.msra.mxu0 %v3883_v8  ;;  %3561 = vmatprep.subr.bf16.mxu1 %v3930_v31  ;;  %v1495_v8 = vld [vmem:[%s5551_s20 + $0xb8] sm:$0xff] }
  0x9a   : > { %3517 = vmatprep.subr.bf16.mxu0 %v3884_v9 }
  0x9c   : > { %3562 = vmatpush3.bf16.msra.mxu1 %v3930_v31  ;;  %v4768_v31 = vld [vmem:[%s4448_s16 + $0x60] sm:$0xff]  }
  0x9d   : > { %3518 = vmatpush3.bf16.msra.mxu0 %v3884_v9  ;;  %3563 = vmatprep.subr.bf16.mxu1 %v3931_v34  ;;  %v3715_v9 = vpack.c.bf16 %v1490_v6, %v1488_v5 }
  0x9e   : > { %3599 = vmatprep.subr.bf16.mxu0 %v3887_v10 }
  0xa0   : > { %3520 = vmatmul.mubr.bf16.vlgmr.msra.gmra.mrb[0].mxu0 %v4518_v11  ;;  %3564 = vmatpush3.bf16.msra.mxu1 %v3931_v34  ;;  %v4782_v34 = vld [vmem:[%s4448_s16 + $0x78] sm:$0xff]  }
  0xa1   : > { %3600 = vmatpush3.bf16.msra.mxu0 %v3887_v10  ;;  %3523 = vmatprep.mubr.bf16.mxu0 %v4521_v12  ;;  %v3717_v10 = vpack.c.bf16 %v1495_v8, %v1493_v7 }
  0xa2   : > { %3601 = vmatprep.subr.bf16.mxu0 %v3890_v13  ;;  %3565 = vmatprep.subr.bf16.mxu1 %v3932_v35 }
  0xa4   : > { %3566 = vmatpush3.bf16.msra.mxu1 %v3932_v35  ;;  %v1501_v35 = vld [vmem:[%s5551_s20 + $0xe8] sm:$0xff] }
  0xa5   : > { %3602 = vmatpush3.bf16.msra.mxu0 %v3890_v13  ;;  %3698 = vmatprep.subr.bf16.mxu1 %v3697_v40  ;;  %v4703_v13 = vld [vmem:[%s4448_s16 + $0x8] sm:$0xff]  }
  0xa6   : > { %3603 = vmatprep.subr.bf16.mxu0 %v3893_v14 }
  0xa7   : > { %3568 = vmatmul.mubr.bf16.vlgmr.msra.gmra.mrb[0].mxu1 %v4518_v11  ;;  %v1492_v11 = vld [vmem:[%s5551_s20 + $0xa0] sm:$0xff] }
  0xa8   : > { %3524 = vmatmul.mubr.bf16.gmra.mrb[4].mxu0 %v4532_v15  ;;  %3571 = vmatprep.mubr.bf16.mxu1 %v4521_v12  ;;  %v1494_v12 = vld [vmem:[%s5551_s20 + $0xb0] sm:$0xff] }
  0xa9   : > { %3527 = vmatprep.mubr.bf16.mxu0 %v4535_v16  ;;  %3604 = vmatpush3.bf16.msra.mxu0 %v3893_v14  ;;  %v1497_v14 = vld [vmem:[%s5551_s20 + $0xc8] sm:$0xff] }
  0xaa   : > { %3605 = vmatprep.subr.bf16.mxu0 %v3896_v17  ;;  %3700 = vmatpush1.bf16.msra.mxu1 %v3699_v45 }
  0xab   : > { %3702 = vmatprep.subr.bf16.mxu1 %v3701_v46 }
  0xad   : > { %3606 = vmatpush3.bf16.msra.mxu0 %v3896_v17  ;;  %v3719_v17 = vpack.c.bf16 %v1494_v12, %v1492_v11 }
  0xae   : > { %3607 = vmatprep.subr.bf16.mxu0 %v3899_v18  ;;  %3704 = vmatpush1.bf16.msra.mxu1 %v3703_v53 }
  0xaf   : > { %3706 = vmatprep.subr.bf16.mxu1 %v3705_v54  ;;  %3572 = vmatmul.mubr.bf16.gmra.mrb[4].mxu1 %v4532_v15  ;;  %v1499_v15 = vld [vmem:[%s5551_s20 + $0xd8] sm:$0xff] }
  0xb0   : > { %3528 = vmatmul.mubr.bf16.gmra.mrb[8].mxu0 %v4549_v20  ;;  %3575 = vmatprep.mubr.bf16.mxu1 %v4535_v16  ;;  %v4712_v16 = vld [vmem:[%s4448_s16 + $0x10] sm:$0xff]  }
  0xb1   : > { %3531 = vmatprep.mubr.bf16.mxu0 %v4555_v22  ;;  %3608 = vmatpush3.bf16.msra.mxu0 %v3899_v18  ;;  %v3721_v18 = vpack.c.bf16 %v1499_v15, %v1497_v14 }
  0xb2   : > { %3609 = vmatprep.subr.bf16.mxu0 %v3902_v23  ;;  %3708 = vmatpush1.bf16.msra.mxu1 %v3707_v59 }
  0xb3   : > { %3710 = vmatprep.subr.bf16.mxu1 %v3709_v60 }
  0xb5   : > { %3610 = vmatpush3.bf16.msra.mxu0 %v3902_v23  ;;  %v4728_v23 = vld [vmem:[%s4448_s16 + $0x20] sm:$0xff]  }
  0xb6   : > { %3611 = vmatprep.subr.bf16.mxu0 %v3905_v25  ;;  %3712 = vmatpush1.bf16.msra.mxu1 %v3711_v3 }
  0xb7   : > { %3714 = vmatprep.subr.bf16.mxu1 %v3713_v4  ;;  %3576 = vmatmul.mubr.bf16.gmra.mrb[8].mxu1 %v4549_v20  ;;  %v3723_v20 = vpack.c.bf16 %v1498_v21, %v1496_v19 }
  0xb8   : > { %3532 = vmatmul.mubr.bf16.gmra.mrb[12].mxu0 %v4572_v27  ;;  %3579 = vmatprep.mubr.bf16.mxu1 %v4555_v22  ;;  %v4725_v22 = vld [vmem:[%s4448_s16 + $0x18] sm:$0xff]  }
  0xb9   : > { %3535 = vmatprep.mubr.bf16.mxu0 %v4575_v28  ;;  %3612 = vmatpush3.bf16.msra.mxu0 %v3905_v25  ;;  %v4738_v25 = vld [vmem:[%s4448_s16 + $0x30] sm:$0xff]  }
  0xba   : > { %3613 = vmatprep.subr.bf16.mxu0 %v3908_v29  ;;  %3716 = vmatpush1.bf16.msra.mxu1 %v3715_v9 }
  0xbb   : > { %3718 = vmatprep.subr.bf16.mxu1 %v3717_v10 }
  0xbd   : > { %3614 = vmatpush3.bf16.msra.mxu0 %v3908_v29  ;;  %v4758_v29 = vld [vmem:[%s4448_s16 + $0x50] sm:$0xff]  }
  0xbe   : > { %3720 = vmatpush1.bf16.msra.mxu1 %v3719_v17 }
  0xbf   : > { %3722 = vmatprep.subr.bf16.mxu1 %v3721_v18  ;;  %3580 = vmatmul.mubr.bf16.gmra.mrb[12].mxu1 %v4572_v27  ;;  %v4748_v27 = vld [vmem:[%s4448_s16 + $0x40] sm:$0xff]  }
  0xc0   : > { %3536 = vmatmul.mubr.bf16.gmra.mrb[16].mxu0 %v4589_v32  ;;  %3583 = vmatprep.mubr.bf16.mxu1 %v4575_v28  ;;  %v4755_v28 = vld [vmem:[%s4448_s16 + $0x48] sm:$0xff]  }
  0xc1   : > { %3539 = vmatprep.mubr.bf16.mxu0 %v4592_v33 }
  0xc2   : > { %3724 = vmatpush1.bf16.msra.mxu1 %v3723_v20 }
  0xc7   : > { %3584 = vmatmul.mubr.bf16.gmra.mrb[16].mxu1 %v4589_v32  ;;  %v4774_v32 = vld [vmem:[%s4448_s16 + $0x68] sm:$0xff]  }
  0xc8   : > { %3540 = vmatmul.mubr.bf16.gmra.mrb[20].mxu0 %v4603_v36  ;;  %3587 = vmatprep.mubr.bf16.mxu1 %v4592_v33  ;;  %v4777_v33 = vld [vmem:[%s4448_s16 + $0x70] sm:$0xff]  }
  0xc9   : > { %3543 = vmatprep.mubr.bf16.mxu0 %v4612_v39 }
  0xcf   : > { %3588 = vmatmul.mubr.bf16.gmra.mrb[20].mxu1 %v4603_v36  ;;  %v1503_v36 = vld [vmem:[%s5551_s20 + $0xf8] sm:$0xff] }
  0xd0   : > { %3544 = vmatmul.mubr.bf16.gmra.mrb[24].mxu0 %v4635_v49  ;;  %3591 = vmatprep.mubr.bf16.mxu1 %v4612_v39  ;;  %v3725_v37 = vpack.c.bf16 %v1503_v36, %v1501_v35  ;;  %v1502_v39 = vld [vmem:[%s5551_s20 + $0xf0] sm:$0xff] }
  0xd1   : > { %3547 = vmatprep.mubr.bf16.mxu0 %v4644_v52  ;;  %v3727_v40 = vpack.c.bf16 %v1502_v39, %v1500_v38 }
  0xd2   : > { %3726 = vmatprep.subr.bf16.mxu1 %v3725_v37 }
  0xd3   : > { %3728 = vmatpush1.bf16.msra.mxu1 %v3727_v40 }
  0xd7   : > { %3592 = vmatmul.mubr.bf16.gmra.mrb[24].mxu1 %v4635_v49 }
  0xd8   : > { %3548 = vmatmul.mubr.bf16.gmra.mrb[28].mxu0 %v4669_v63  ;;  %3595 = vmatprep.mubr.bf16.mxu1 %v4644_v52 }
  0xd9   : > { %3615 = vmatprep.mubr.bf16.mxu0 %v4678_v2 }
  0xdf   : > { %3596 = vmatmul.mubr.bf16.gmra.mrb[28].mxu1 %v4669_v63 }
  0xe0   : > { %3616 = vmatmul.mubr.bf16.vlgmr.msra.gmra.mrb[0].mxu0 %v4703_v13  ;;  %1568 = vmatprep.mubr.f32.mxu1 %v4190_v41 }
  0xe1   : > { %3619 = vmatprep.mubr.bf16.mxu0 %v4712_v16 }
  0xe8   : > { %3620 = vmatmul.mubr.bf16.gmra.mrb[4].mxu0 %v4725_v22 }
  0xe9   : > { %3623 = vmatprep.mubr.bf16.mxu0 %v4728_v23 }
  0xf0   : > { %3624 = vmatmul.mubr.bf16.gmra.mrb[8].mxu0 %v4735_v24 }
  0xf1   : > { %3627 = vmatprep.mubr.bf16.mxu0 %v4738_v25 }
  0xf8   : > { %3628 = vmatmul.mubr.bf16.gmra.mrb[12].mxu0 %v4745_v26 }
  0xf9   : > { %3631 = vmatprep.mubr.bf16.mxu0 %v4748_v27 }
 0x100   : > { %3632 = vmatmul.mubr.bf16.gmra.mrb[16].mxu0 %v4755_v28 }
 0x101   : > { %3635 = vmatprep.mubr.bf16.mxu0 %v4758_v29 }
 0x108   : > { %3636 = vmatmul.mubr.bf16.gmra.mrb[20].mxu0 %v4765_v30 }
 0x109   : > { %3639 = vmatprep.mubr.bf16.mxu0 %v4768_v31 }
 0x110   : > { %3640 = vmatmul.mubr.bf16.gmra.mrb[24].mxu0 %v4774_v32 }
 0x111   : > { %3643 = vmatprep.mubr.bf16.mxu0 %v4777_v33 }
 0x118   : > { %3644 = vmatmul.mubr.bf16.gmra.mrb[28].mxu0 %v4782_v34 }
 0x17a   : > { %v3569_v43 = vpop.f32.mrb[0].mxu1 }
 0x17b   : > { %v944_v44 = vpop.f32.mrb[1].mxu1  ;;  %2029 = vperm.xlu1 %3876, %v3569_v43  }
 0x17c   : > { %2019 = vperm.xlu0 %3875, %v944_v44   ;;  %v3570_v45 = vpop.f32.mrb[2].mxu1 }
 0x17d   : > { %v947_v46 = vpop.f32.mrb[3].mxu1 }
 0x17f   : > { %2034 = vperm.xlu1 %3876, %v3570_v45  }
 0x180   : > { %2024 = vperm.xlu0 %3875, %v947_v46  }
 0x182   : > { %v3573_v47 = vpop.f32.mrb[4].mxu1 }
 0x183   : > { %v960_v48 = vpop.f32.mrb[5].mxu1 }
 0x184   : > { %2039 = vperm.xlu0 %3875, %v960_v48   ;;  %v3574_v49 = vpop.f32.mrb[6].mxu1 }
 0x185   : > { %v963_v50 = vpop.f32.mrb[7].mxu1 }
 0x186   : > { %2044 = vperm.xlu1 %3876, %v963_v50  }
 0x188   : > { %2049 = vperm.xlu0 %3875, %v3573_v47  }
 0x18a   : > { %v3577_v51 = vpop.f32.mrb[8].mxu1  ;;  %2054 = vperm.xlu1 %3876, %v3574_v49  }
 0x18b   : > { %v976_v52 = vpop.f32.mrb[9].mxu1 }
 0x18c   : > { %2059 = vperm.xlu0 %3875, %v976_v52   ;;  %v3578_v53 = vpop.f32.mrb[10].mxu1 }
 0x18d   : > { %v979_v55 = vpop.f32.mrb[11].mxu1 }
 0x18e   : > { %2064 = vperm.xlu1 %3876, %v979_v55  }
 0x190   : > { %2069 = vperm.xlu0 %3875, %v3577_v51  }
 0x192   : > { %v3581_v62 = vpop.f32.mrb[12].mxu1  ;;  %2074 = vperm.xlu1 %3876, %v3578_v53  }
 0x193   : > { %v992_v63 = vpop.f32.mrb[13].mxu1 }
 0x194   : > { %2079 = vperm.xlu0 %3875, %v992_v63   ;;  %v3582_v0 = vpop.f32.mrb[14].mxu1 }
 0x195   : > { %v995_v5 = vpop.f32.mrb[15].mxu1 }
 0x196   : > { %2084 = vperm.xlu1 %3876, %v995_v5  }
 0x198   : > { %2089 = vperm.xlu0 %3875, %v3581_v62  }
 0x19a   : > { %v3585_v11 = vpop.f32.mrb[16].mxu1  ;;  %2094 = vperm.xlu1 %3876, %v3582_v0  }
 0x19b   : > { %v1008_v12 = vpop.f32.mrb[17].mxu1 }
 0x19c   : > { %2099 = vperm.xlu0 %3875, %v1008_v12   ;;  %v3586_v14 = vpop.f32.mrb[18].mxu1 }
 0x19d   : > { %v1011_v19 = vpop.f32.mrb[19].mxu1 }
 0x19e   : > { %2104 = vperm.xlu1 %3876, %v1011_v19  }
 0x1a0   : > { %2109 = vperm.xlu0 %3875, %v3585_v11  }
 0x1a2   : > { %v3589_v38 = vpop.f32.mrb[20].mxu1  ;;  %2114 = vperm.xlu1 %3876, %v3586_v14  }
 0x1a3   : > { %v1024_v39 = vpop.f32.mrb[21].mxu1 }
 0x1a4   : > { %2119 = vperm.xlu0 %3875, %v1024_v39   ;;  %v3590_v40 = vpop.f32.mrb[22].mxu1 }
 0x1a5   : > { %v1027_v45 = vpop.f32.mrb[23].mxu1 }
 0x1a6   : > { %2124 = vperm.xlu1 %3876, %v1027_v45  }
 0x1a8   : > { %2129 = vperm.xlu0 %3875, %v3589_v38  }
 0x1aa   : > { %v3593_v51 = vpop.f32.mrb[24].mxu1  ;;  %2134 = vperm.xlu1 %3876, %v3590_v40  }
 0x1ab   : > { %v1040_v52 = vpop.f32.mrb[25].mxu1 }
 0x1ac   : > { %2139 = vperm.xlu0 %3875, %v1040_v52   ;;  %v3594_v53 = vpop.f32.mrb[26].mxu1 }
 0x1b0   : > { %2149 = vperm.xlu0 %3875, %v3593_v51  }
 0x1b3   : > { %v3617_v54 = vpop.f32.mrb[0].mxu0 }
 0x1b4   : > { %v1249_v56 = vpop.f32.mrb[1].mxu0  ;;  %v1410_v1 = vmul.f32 0.2, %v3617_v54  ;;  %vm1378_vm3 = vcmp.ge.f32.partialorder %v3617_v54, 0.0 }
 0x1b5   : > { %vm1376_vm1 = vcmp.ge.f32.partialorder %v1249_v56, 0.0  ;;  %v1408_v57 = vmul.f32 0.2, %v1249_v56  ;;  %v3618_v58 = vpop.f32.mrb[2].mxu0 }
 0x1b6   : > { %v1252_v59 = vpop.f32.mrb[3].mxu0  ;;  %v1411_v9 = vmul.f32 0.2, %v3618_v58  ;;  %v1442_v10 = vsel %vm1378_vm3, %v3617_v54, %v1410_v1  ;;  %vm1379_vm4 = vcmp.ge.f32.partialorder %v3618_v58, 0.0 }
 0x1b7   : > { %v1440_v60 = vsel %vm1376_vm1, %v1249_v56, %v1408_v57  ;;  %v1409_v61 = vmul.f32 0.2, %v1252_v59  ;;  %vm1377_vm2 = vcmp.ge.f32.partialorder %v1252_v59, 0.0  ;;  %v1043_v57 = vpop.f32.mrb[27].mxu1 }
 0x1b8   : > { %1569 = vmatmul.mubr.f32.vlgmr.msra.gmra.mrb[32].mxu1 %v1440_v60  ;;  %v1443_v18 = vsel %vm1379_vm4, %v3618_v58, %v1411_v9  ;;  %2144 = vperm.xlu1 %3876, %v1043_v57   ;;  %v3597_v63 = vpop.f32.mrb[28].mxu1 }
 0x1b9   : > { %1574 = vmatprep.mubr.f32.mxu1 %v4190_v41  ;;  %v1441_v4 = vsel %vm1377_vm2, %v1252_v59, %v1409_v61  ;;  %v1056_v0 = vpop.f32.mrb[29].mxu1 }
 0x1ba   : > { %2159 = vperm.xlu0 %3875, %v1056_v0   ;;  %v3598_v1 = vpop.f32.mrb[30].mxu1 }
 0x1bb   : > { %v3621_v3 = vpop.f32.mrb[4].mxu0 }
 0x1bc   : > { %v1265_v6 = vpop.f32.mrb[5].mxu0  ;;  %1575 = vmatmul.mubr.f32.gmra.mrb[34].mxu1 %v1441_v4  ;;  %v1414_v42 = vmul.f32 0.2, %v3621_v3  ;;  %vm1382_vm7 = vcmp.ge.f32.partialorder %v3621_v3, 0.0  ;;  %2154 = vperm.xlu1 %3876, %v3594_v53  }
 0x1bd   : > { %v3622_v7 = vpop.f32.mrb[6].mxu0  ;;  %1580 = vmatprep.mubr.f32.mxu1 %v4190_v41  ;;  %v1412_v15 = vmul.f32 0.2, %v1265_v6  ;;  %vm1380_vm5 = vcmp.ge.f32.partialorder %v1265_v6, 0.0 }
 0x1be   : > { %v1268_v8 = vpop.f32.mrb[7].mxu0  ;;  %v1415_v49 = vmul.f32 0.2, %v3622_v7  ;;  %v1446_v50 = vsel %vm1382_vm7, %v3621_v3, %v1414_v42  ;;  %vm1383_vm8 = vcmp.ge.f32.partialorder %v3622_v7, 0.0  ;;  %2169 = vperm.xlu0 %3875, %v3597_v63  }
 0x1bf   : > { %v1413_v36 = vmul.f32 0.2, %v1268_v8  ;;  %v1444_v37 = vsel %vm1380_vm5, %v1265_v6, %v1412_v15  ;;  %vm1381_vm6 = vcmp.ge.f32.partialorder %v1268_v8, 0.0  ;;  %v1059_v6 = vpop.f32.mrb[31].mxu1 }
 0x1c0   : > { %1581 = vmatmul.mubr.f32.gmra.mrb[36].mxu1 %v1442_v10  ;;  %v1447_v56 = vsel %vm1383_vm8, %v3622_v7, %v1415_v49  ;;  %2164 = vperm.xlu1 %3876, %v1059_v6  }
 0x1c1   : > { %1586 = vmatprep.mubr.f32.mxu1 %v4190_v41  ;;  %v1445_v44 = vsel %vm1381_vm6, %v1268_v8, %v1413_v36 }
 0x1c3   : > { %v4801_v17 = vpop.f32.mrb[8].mxu0 }
 0x1c4   : > { %v1281_v21 = vpop.f32.mrb[9].mxu0  ;;  %1587 = vmatmul.mubr.f32.gmra.mrb[38].mxu1 %v1443_v18  ;;  %v1418_v3 = vmul.f32 0.2, %v4801_v17  ;;  %vm1386_vm11 = vcmp.ge.f32.partialorder %v4801_v17, 0.0  ;;  %2174 = vperm.xlu1 %3876, %v3598_v1  }
 0x1c5   : > { %v4803_v20 = vpop.f32.mrb[10].mxu0  ;;  %1592 = vmatprep.mubr.f32.mxu1 %v4190_v41  ;;  %v1416_v54 = vmul.f32 0.2, %v1281_v21  ;;  %vm1384_vm9 = vcmp.ge.f32.partialorder %v1281_v21, 0.0 }
 0x1c6   : > { %v1284_v35 = vpop.f32.mrb[11].mxu0  ;;  %v1419_v10 = vmul.f32 0.2, %v4803_v20  ;;  %v1450_v11 = vsel %vm1386_vm11, %v4801_v17, %v1418_v3  ;;  %vm1387_vm12 = vcmp.ge.f32.partialorder %v4803_v20, 0.0 }
 0x1c7   : > { %v1417_v61 = vmul.f32 0.2, %v1284_v35  ;;  %v1448_v62 = vsel %vm1384_vm9, %v1281_v21, %v1416_v54  ;;  %vm1385_vm10 = vcmp.ge.f32.partialorder %v1284_v35, 0.0 }
 0x1c8   : > { %1593 = vmatmul.mubr.f32.gmra.mrb[40].mxu1 %v1444_v37  ;;  %v1451_v15 = vsel %vm1387_vm12, %v4803_v20, %v1419_v10 }
 0x1c9   : > { %1598 = vmatprep.mubr.f32.mxu1 %v4190_v41  ;;  %v1449_v5 = vsel %vm1385_vm10, %v1284_v35, %v1417_v61 }
 0x1cb   : > { %v4807_v43 = vpop.f32.mrb[12].mxu0 }
 0x1cc   : > { %v4809_v46 = vpop.f32.mrb[13].mxu0  ;;  %1599 = vmatmul.mubr.f32.gmra.mrb[42].mxu1 %v1445_v44  ;;  %v1422_v20 = vmul.f32 0.2, %v4807_v43  ;;  %vm1390_vm15 = vcmp.ge.f32.partialorder %v4807_v43, 0.0 }
 0x1cd   : > { %v4811_v47 = vpop.f32.mrb[14].mxu0  ;;  %1604 = vmatprep.mubr.f32.mxu1 %v4190_v41  ;;  %v1420_v12 = vmul.f32 0.2, %v4809_v46  ;;  %vm1388_vm13 = vcmp.ge.f32.partialorder %v4809_v46, 0.0 }
 0x1ce   : > { %v4814_v48 = vpop.f32.mrb[15].mxu0  ;;  %v1423_v42 = vmul.f32 0.2, %v4811_v47  ;;  %v1454_v44 = vsel %vm1390_vm15, %v4807_v43, %v1422_v20  ;;  %vm1391_vm0 = vcmp.ge.f32.partialorder %v4811_v47, 0.0 }
 0x1cf   : > { %v1421_v21 = vmul.f32 0.2, %v4814_v48  ;;  %v1452_v35 = vsel %vm1388_vm13, %v4809_v46, %v1420_v12  ;;  %vm1389_vm14 = vcmp.ge.f32.partialorder %v4814_v48, 0.0  ;;  %vm2307_vm13 = vcmask 1043456  }
 0x1d0   : > { %1605 = vmatmul.mubr.f32.gmra.mrb[44].mxu1 %v1446_v50  ;;  %v1455_v46 = vsel %vm1391_vm0, %v4811_v47, %v1423_v42 }
 0x1d1   : > { %1610 = vmatprep.mubr.f32.mxu1 %v4190_v41  ;;  %v1453_v37 = vsel %vm1389_vm14, %v4814_v48, %v1421_v21 }
 0x1d3   : > { %v4817_v55 = vpop.f32.mrb[16].mxu0 }
 0x1d4   : > { %v4819_v58 = vpop.f32.mrb[17].mxu0  ;;  %1611 = vmatmul.mubr.f32.gmra.mrb[46].mxu1 %v1447_v56  ;;  %v1426_v43 = vmul.f32 0.2, %v4817_v55  ;;  %vm1394_vm3 = vcmp.ge.f32.partialorder %v4817_v55, 0.0 }
 0x1d5   : > { %v4821_v59 = vpop.f32.mrb[18].mxu0  ;;  %1616 = vmatprep.mubr.f32.mxu1 %v4190_v41  ;;  %v1424_v45 = vmul.f32 0.2, %v4819_v58  ;;  %vm1392_vm1 = vcmp.ge.f32.partialorder %v4819_v58, 0.0 }
 0x1d6   : > { %v4824_v60 = vpop.f32.mrb[19].mxu0  ;;  %v1427_v47 = vmul.f32 0.2, %v4821_v59  ;;  %v1458_v51 = vsel %vm1394_vm3, %v4817_v55, %v1426_v43  ;;  %vm1395_vm4 = vcmp.ge.f32.partialorder %v4821_v59, 0.0 }
 0x1d7   : > { %v1425_v48 = vmul.f32 0.2, %v4824_v60  ;;  %v1456_v49 = vsel %vm1392_vm1, %v4819_v58, %v1424_v45  ;;  %vm1393_vm2 = vcmp.ge.f32.partialorder %v4824_v60, 0.0 }
 0x1d8   : > { %1617 = vmatmul.mubr.f32.gmra.mrb[48].mxu1 %v1448_v62  ;;  %v1459_v53 = vsel %vm1395_vm4, %v4821_v59, %v1427_v47 }
 0x1d9   : > { %1622 = vmatprep.mubr.f32.mxu1 %v4190_v41  ;;  %v1457_v50 = vsel %vm1393_vm2, %v4824_v60, %v1425_v48 }
 0x1db   : > { %v4828_v4 = vpop.f32.mrb[20].mxu0 }
 0x1dc   : > { %v4831_v7 = vpop.f32.mrb[21].mxu0  ;;  %1623 = vmatmul.mubr.f32.gmra.mrb[50].mxu1 %v1449_v5  ;;  %2632 = vxpose.xlu0.c.b16.start [1/8] %v4748_v27, 128  ;;  %vm1398_vm7 = vcmp.ge.f32.partialorder %v4828_v4, 0.0 }
 0x1dd   : > { %v4833_v8 = vpop.f32.mrb[22].mxu0  ;;  %1628 = vmatprep.mubr.f32.mxu1 %v4190_v41  ;;  %v1428_v52 = vmul.f32 0.2, %v4831_v7  ;;  %vm1396_vm5 = vcmp.ge.f32.partialorder %v4831_v7, 0.0 }
 0x1de   : > { %v4836_v9 = vpop.f32.mrb[23].mxu0  ;;  %vm1399_vm8 = vcmp.ge.f32.partialorder %v4833_v8, 0.0 }
 0x1df   : > { %v1429_v27 = vmul.f32 0.2, %v4836_v9  ;;  %v1460_v54 = vsel %vm1396_vm5, %v4831_v7, %v1428_v52  ;;  %vm1397_vm6 = vcmp.ge.f32.partialorder %v4836_v9, 0.0 }
 0x1e0   : > { %1629 = vmatmul.mubr.f32.gmra.mrb[52].mxu1 %v1450_v11  ;;  %2633 = vxpose.xlu0.c.b16.cont [2/8] %v4755_v28, 128 }
 0x1e1   : > { %1634 = vmatprep.mubr.f32.mxu1 %v4190_v41  ;;  %v1461_v28 = vsel %vm1397_vm6, %v4836_v9, %v1429_v27  ;;  %vm2210_vm6 = vcmask 31744  }
 0x1e3   : > { %v4843_v14 = vpop.f32.mrb[24].mxu0 }
 0x1e4   : > { %v4847_v18 = vpop.f32.mrb[25].mxu0  ;;  %1635 = vmatmul.mubr.f32.gmra.mrb[54].mxu1 %v1451_v15  ;;  %2634 = vxpose.xlu0.c.b16.cont [3/8] %v4758_v29, 128  ;;  %vm1402_vm11 = vcmp.ge.f32.partialorder %v4843_v14, 0.0 }
 0x1e5   : > { %v4849_v19 = vpop.f32.mrb[26].mxu0  ;;  %1640 = vmatprep.mubr.f32.mxu1 %v4190_v41  ;;  %vm1400_vm9 = vcmp.ge.f32.partialorder %v4847_v18, 0.0 }
 0x1e6   : > { %v4852_v17 = vpop.f32.mrb[27].mxu0  ;;  %vm1403_vm12 = vcmp.ge.f32.partialorder %v4849_v19, 0.0 }
 0x1e7   : > { %2616 = vxpose.xlu1.c.b16.start [1/8] %v4678_v2, 128  ;;  %v1430_v2 = vmul.f32 0.2, %v4828_v4  ;;  %vm1401_vm10 = vcmp.ge.f32.partialorder %v4852_v17, 0.0 }
 0x1e8   : > { %1641 = vmatmul.mubr.f32.gmra.mrb[56].mxu1 %v1452_v35  ;;  %2635 = vxpose.xlu0.c.b16.cont [4/8] %v4765_v30, 128 }
 0x1e9   : > { %1646 = vmatprep.mubr.f32.mxu1 %v4190_v41  ;;  %v1462_v29 = vsel %vm1398_vm7, %v4828_v4, %v1430_v2 }
 0x1eb   : > { %v4859_v36 = vpop.f32.mrb[28].mxu0  ;;  %2617 = vxpose.xlu1.c.b16.cont [2/8] %v4703_v13, 128  ;;  %v1431_v13 = vmul.f32 0.2, %v4833_v8 }
 0x1ec   : > { %v4863_v38 = vpop.f32.mrb[29].mxu0  ;;  %1647 = vmatmul.mubr.f32.gmra.mrb[58].mxu1 %v1453_v37  ;;  %2636 = vxpose.xlu0.c.b16.cont [5/8] %v4768_v31, 128  ;;  %v1438_v57 = vmul.f32 0.2, %v4859_v36  ;;  %vm1406_vm0 = vcmp.ge.f32.partialorder %v4859_v36, 0.0 }
 0x1ed   : > { %v4865_v39 = vpop.f32.mrb[30].mxu0  ;;  %1652 = vmatprep.mubr.f32.mxu1 %v4190_v41  ;;  %v1463_v30 = vsel %vm1399_vm8, %v4833_v8, %v1431_v13  ;;  %vm1404_vm14 = vcmp.ge.f32.partialorder %v4863_v38, 0.0 }
 0x1ee   : > { %v4868_v40 = vpop.f32.mrb[31].mxu0  ;;  %v1439_v59 = vmul.f32 0.2, %v4865_v39  ;;  %v1470_v60 = vsel %vm1406_vm0, %v4859_v36, %v1438_v57  ;;  %vm1407_vm1 = vcmp.ge.f32.partialorder %v4865_v39, 0.0 }
 0x1ef   : > { %2618 = vxpose.xlu1.c.b16.cont [3/8] %v4712_v16, 128  ;;  %v1432_v16 = vmul.f32 0.2, %v4847_v18  ;;  %vm1405_vm15 = vcmp.ge.f32.partialorder %v4868_v40, 0.0 }
 0x1f0   : > { %1653 = vmatmul.mubr.f32.gmra.mrb[60].mxu1 %v1454_v44  ;;  %2637 = vxpose.xlu0.c.b16.cont [6/8] %v4774_v32, 128  ;;  %v1471_v61 = vsel %vm1407_vm1, %v4865_v39, %v1439_v59 }
 0x1f1   : > { %1658 = vmatprep.mubr.f32.mxu1 %v4190_v41  ;;  %v1464_v31 = vsel %vm1400_vm9, %v4847_v18, %v1432_v16 }
 0x1f3   : > { %2619 = vxpose.xlu1.c.b16.cont [4/8] %v4725_v22, 128  ;;  %v1433_v22 = vmul.f32 0.2, %v4852_v17 }
 0x1f4   : > { %1659 = vmatmul.mubr.f32.gmra.mrb[62].mxu1 %v1455_v46  ;;  %2638 = vxpose.xlu0.c.b16.cont [7/8] %v4777_v33, 128 }
 0x1f5   : > { %1664 = vmatprep.mubr.f32.mxu1 %v4190_v41  ;;  %v1465_v32 = vsel %vm1401_vm10, %v4852_v17, %v1433_v22 }
 0x1f7   : > { %2620 = vxpose.xlu1.c.b16.cont [5/8] %v4728_v23, 128  ;;  %v1434_v23 = vmul.f32 0.2, %v4843_v14 }
 0x1f8   : > { %1665 = vmatmul.mubr.f32.gmra.mrb[64].mxu1 %v1456_v49  ;;  %2639 = vxpose.xlu0.c.b16.end [8/8] %v4782_v34, 128  ;;  %v2209_v34 = vld [vmem:[%s5552_s25] sm:$0xf] }
 0x1f9   : > { %1670 = vmatprep.mubr.f32.mxu1 %v4190_v41  ;;  %v1466_v33 = vsel %vm1402_vm11, %v4843_v14, %v1434_v23  ;;  %3647 = vmatprep.subr.msk.mxu0 %vm2307_vm13, %v2209_v34 }
 0x1fa   : > { %3648 = vmatpush3.msk.msra.mxu0 %vm2307_vm13, %v2209_v34  ;;  %v2030_v43 = vpop.permute.xlu1 %2029 }
 0x1fb   : > { %2621 = vxpose.xlu1.c.b16.cont [6/8] %v4735_v24, 128  ;;  %v1435_v24 = vmul.f32 0.2, %v4849_v19  ;;  %v2020_v14 = vpop.permute.xlu0 %2019 }
 0x1fc   : > { %1671 = vmatmul.mubr.f32.gmra.mrb[66].mxu1 %v1457_v50 }
 0x1fd   : > { %1676 = vmatprep.mubr.f32.mxu1 %v4190_v41  ;;  %v1467_v55 = vsel %vm1403_vm12, %v4849_v19, %v1435_v24 }
 0x1fe   : > { %v2035_v16 = vpop.permute.xlu1 %2034 }
 0x1ff   : > { %2622 = vxpose.xlu1.c.b16.cont [7/8] %v4738_v25, 128  ;;  %v1436_v25 = vmul.f32 0.2, %v4863_v38  ;;  %v2025_v39 = vpop.permute.xlu0 %2024 }
 0x200   : > { %1677 = vmatmul.mubr.f32.gmra.mrb[68].mxu1 %v1458_v51 }
 0x201   : > { %1682 = vmatprep.mubr.f32.mxu1 %v4190_v41  ;;  %v1468_v56 = vsel %vm1404_vm14, %v4863_v38, %v1436_v25 }
 0x203   : > { %2623 = vxpose.xlu1.c.b16.end [8/8] %v4745_v26, 128  ;;  %v1437_v26 = vmul.f32 0.2, %v4868_v40  ;;  %v2040_v25 = vpop.permute.xlu0 %2039 }
 0x204   : > { %1683 = vmatmul.mubr.f32.gmra.mrb[70].mxu1 %v1459_v53 }
 0x205   : > { %1688 = vmatprep.mubr.f32.mxu1 %v4190_v41  ;;  %v1469_v58 = vsel %vm1405_vm15, %v4868_v40, %v1437_v26 }
 0x208   : > { %1689 = vmatmul.mubr.f32.gmra.mrb[72].mxu1 %v1460_v54 }
 0x209   : > { %1694 = vmatprep.mubr.f32.mxu1 %v4190_v41 }
 0x20c   : > { %1695 = vmatmul.mubr.f32.gmra.mrb[74].mxu1 %v1461_v28 }
 0x20d   : > { %1700 = vmatprep.mubr.f32.mxu1 %v4190_v41 }
 0x210   : > { %1701 = vmatmul.mubr.f32.gmra.mrb[76].mxu1 %v1462_v29 }
 0x211   : > { %1706 = vmatprep.mubr.f32.mxu1 %v4190_v41 }
 0x214   : > { %1707 = vmatmul.mubr.f32.gmra.mrb[78].mxu1 %v1463_v30 }
 0x215   : > { %1712 = vmatprep.mubr.f32.mxu1 %v4190_v41 }
 0x218   : > { %1713 = vmatmul.mubr.f32.gmra.mrb[80].mxu1 %v1464_v31 }
 0x219   : > { %1718 = vmatprep.mubr.f32.mxu1 %v4190_v41 }
 0x21c   : > { %1719 = vmatmul.mubr.f32.gmra.mrb[82].mxu1 %v1465_v32 }
 0x21d   : > { %1724 = vmatprep.mubr.f32.mxu1 %v4190_v41 }
 0x220   : > { %1725 = vmatmul.mubr.f32.gmra.mrb[84].mxu1 %v1466_v33 }
 0x221   : > { %1730 = vmatprep.mubr.f32.mxu1 %v4190_v41 }
 0x224   : > { %1731 = vmatmul.mubr.f32.gmra.mrb[86].mxu1 %v1467_v55 }
 0x225   : > { %1736 = vmatprep.mubr.f32.mxu1 %v4190_v41 }
 0x228   : > { %1737 = vmatmul.mubr.f32.gmra.mrb[88].mxu1 %v1468_v56 }
 0x229   : > { %1742 = vmatprep.mubr.f32.mxu1 %v4190_v41 }
 0x22c   : > { %1743 = vmatmul.mubr.f32.gmra.mrb[90].mxu1 %v1469_v58 }
 0x22d   : > { %1748 = vmatprep.mubr.f32.mxu1 %v4190_v41 }
 0x230   : > { %1749 = vmatmul.mubr.f32.gmra.mrb[92].mxu1 %v1470_v60 }
 0x231   : > { %1754 = vmatprep.mubr.f32.mxu1 %v4190_v41 }
 0x234   : > { %1755 = vmatmul.mubr.f32.gmra.mrb[94].mxu1 %v1471_v61  ;;  %v2045_v61 = vpop.permute.xlu1 %2044 }
 0x28b   : > { %v4958_v62 = vpop.f32.mrb[32].mxu1 }
 0x28c   : > { %v1572_v63 = vpop.f32.mrb[33].mxu1 }
 0x28d   : > { %vm1762_vm2 = vcmp.ge.f32.partialorder %v1572_v63, 0.0  ;;  %v1826_v0 = vmul.f32 0.2, %v1572_v63 }
 0x28f   : > { %v1890_v1 = vsel %vm1762_vm2, %v1572_v63, %v1826_v0  ;;  %v4960_v3 = vpop.f32.mrb[34].mxu1 }
 0x290   : > { %v1953_v4 = vmul.f32 1.442695, %v1890_v1  ;;  %v1578_v5 = vpop.f32.mrb[35].mxu1 }
 0x291   : > { %vm1764_vm3 = vcmp.ge.f32.partialorder %v1578_v5, 0.0  ;;  %v1828_v6 = vmul.f32 0.2, %v1578_v5 }
 0x292   : > { %3933 = vpow2.f32 %v1953_v4 }
 0x293   : > { %v1892_v7 = vsel %vm1764_vm3, %v1578_v5, %v1828_v6  ;;  %v4962_v8 = vpop.f32.mrb[36].mxu1 }
 0x294   : > { %v1955_v41 = vmul.f32 1.442695, %v1892_v7  ;;  %v1584_v9 = vpop.f32.mrb[37].mxu1 }
 0x295   : > { %vm1766_vm4 = vcmp.ge.f32.partialorder %v1584_v9, 0.0  ;;  %v1830_v10 = vmul.f32 0.2, %v1584_v9 }
 0x296   : > { %3935 = vpow2.f32 %v1955_v41 }
 0x297   : > { %v1894_v11 = vsel %vm1766_vm4, %v1584_v9, %v1830_v10  ;;  %v4964_v12 = vpop.f32.mrb[38].mxu1  ;;  %v2050_v9 = vpop.permute.xlu0 %2049 }
 0x298   : > { %v1957_v15 = vmul.f32 1.442695, %v1894_v11  ;;  %v1590_v18 = vpop.f32.mrb[39].mxu1 }
 0x299   : > { %vm1768_vm5 = vcmp.ge.f32.partialorder %v1590_v18, 0.0  ;;  %v1832_v19 = vmul.f32 0.2, %v1590_v18 }
 0x29a   : > { %3937 = vpow2.f32 %v1957_v15 }
 0x29b   : > { %v1896_v17 = vsel %vm1768_vm5, %v1590_v18, %v1832_v19  ;;  %v4966_v21 = vpop.f32.mrb[40].mxu1 }
 0x29c   : > { %v3934_v35 = vpop.eup %3933  ;;  %v1959_v20 = vmul.f32 1.442695, %v1896_v17  ;;  %v1596_v36 = vpop.f32.mrb[41].mxu1 }
 0x29d   : > { %vm1770_vm7 = vcmp.ge.f32.partialorder %v1596_v36, 0.0  ;;  %v1834_v37 = vmul.f32 0.2, %v1596_v36  ;;  %v4968_v38 = vmul.f32 %v3934_v35, %v2020_v14  ;;  %v2055_v35 = vpop.permute.xlu1 %2054 }
 0x29e   : > { %3939 = vpow2.f32 %v1959_v20 }
 0x29f   : > { %v1898_v40 = vsel %vm1770_vm7, %v1596_v36, %v1834_v37  ;;  %v4970_v42 = vpop.f32.mrb[42].mxu1  ;;  %3649 = vmatprep.mubr.msk.f32.mxu0 %vm2210_vm6, %v4968_v38 }
 0x2a0   : > { %v3936_v44 = vpop.eup %3935  ;;  %v1961_v45 = vmul.f32 1.442695, %v1898_v40  ;;  %v1602_v46 = vpop.f32.mrb[43].mxu1 }
 0x2a1   : > { %v4974_v48 = vmul.f32 %v3936_v44, %v2025_v39  ;;  %vm1772_vm8 = vcmp.ge.f32.partialorder %v1602_v46, 0.0  ;;  %v1836_v49 = vmul.f32 0.2, %v1602_v46 }
 0x2a2   : > { %3941 = vpow2.f32 %v1961_v45 }
 0x2a3   : > { %v1900_v50 = vsel %vm1772_vm8, %v1602_v46, %v1836_v49  ;;  %v4976_v47 = vpop.f32.mrb[44].mxu1  ;;  %3650 = vmatmul.mubr.msk.f32.vlgmr.msra.gmra.mrb[32].mxu0 %vm2210_vm6, %v4974_v48  ;;  %v2584_v51 = vpack.c.bf16 %v4974_v48, %v4968_v38  ;;  %v2060_v49 = vpop.permute.xlu0 %2059 }
 0x2a4   : > { %v3938_v52 = vpop.eup %3937  ;;  %v1963_v53 = vmul.f32 1.442695, %v1900_v50  ;;  %v1608_v27 = vpop.f32.mrb[45].mxu1 }
 0x2a5   : > { %vm1774_vm9 = vcmp.ge.f32.partialorder %v1608_v27, 0.0  ;;  %v1838_v54 = vmul.f32 0.2, %v1608_v27  ;;  %v4982_v2 = vmul.f32 %v3938_v52, %v2030_v43 }
 0x2a6   : > { %3943 = vpow2.f32 %v1963_v53 }
 0x2a7   : > { %v1902_v28 = vsel %vm1774_vm9, %v1608_v27, %v1838_v54  ;;  %v4984_v13 = vpop.f32.mrb[46].mxu1  ;;  %3652 = vmatprep.mubr.msk.f32.mxu0 %vm2210_vm6, %v4982_v2 }
 0x2a8   : > { %v3940_v29 = vpop.eup %3939  ;;  %v1965_v30 = vmul.f32 1.442695, %v1902_v28  ;;  %v1614_v22 = vpop.f32.mrb[47].mxu1 }
 0x2a9   : > { %vm1776_vm10 = vcmp.ge.f32.partialorder %v1614_v22, 0.0  ;;  %v1840_v31 = vmul.f32 0.2, %v1614_v22  ;;  %v4988_v23 = vmul.f32 %v3940_v29, %v2035_v16  ;;  %v2065_v29 = vpop.permute.xlu1 %2064 }
 0x2aa   : > { %3945 = vpow2.f32 %v1965_v30 }
 0x2ab   : > { %v1904_v32 = vsel %vm1776_vm10, %v1614_v22, %v1840_v31  ;;  %v4990_v24 = vpop.f32.mrb[48].mxu1  ;;  %3653 = vmatmul.mubr.msk.f32.gmra.mrb[34].mxu0 %vm2210_vm6, %v4988_v23  ;;  %v2585_v33 = vpack.c.bf16 %v4988_v23, %v4982_v2 }
 0x2ac   : > { %v3942_v34 = vpop.eup %3941  ;;  %v1967_v55 = vmul.f32 1.442695, %v1904_v32  ;;  %v1620_v26 = vpop.f32.mrb[49].mxu1 }
 0x2ad   : > { %vm1778_vm11 = vcmp.ge.f32.partialorder %v1620_v26, 0.0  ;;  %v1842_v56 = vmul.f32 0.2, %v1620_v26  ;;  %v4996_v57 = vmul.f32 %v3942_v34, %v2040_v25 }
 0x2ae   : > { %3947 = vpow2.f32 %v1967_v55 }
 0x2af   : > { %v1906_v58 = vsel %vm1778_vm11, %v1620_v26, %v1842_v56  ;;  %v4998_v59 = vpop.f32.mrb[50].mxu1  ;;  %3655 = vmatprep.mubr.msk.f32.mxu0 %vm2210_vm6, %v4996_v57  ;;  %v2070_v26 = vpop.permute.xlu0 %2069 }
 0x2b0   : > { %v3944_v60 = vpop.eup %3943  ;;  %v1969_v63 = vmul.f32 1.442695, %v1906_v58  ;;  %v1626_v0 = vpop.f32.mrb[51].mxu1 }
 0x2b1   : > { %vm1780_vm12 = vcmp.ge.f32.partialorder %v1626_v0, 0.0  ;;  %v1844_v1 = vmul.f32 0.2, %v1626_v0  ;;  %v5002_v4 = vmul.f32 %v3944_v60, %v2045_v61 }
 0x2b2   : > { %3949 = vpow2.f32 %v1969_v63 }
 0x2b3   : > { %v1908_v5 = vsel %vm1780_vm12, %v1626_v0, %v1844_v1  ;;  %v5004_v6 = vpop.f32.mrb[52].mxu1  ;;  %3656 = vmatmul.mubr.msk.f32.gmra.mrb[36].mxu0 %vm2210_vm6, %v5002_v4  ;;  %v2586_v7 = vpack.c.bf16 %v5002_v4, %v4996_v57 }
 0x2b4   : > { %v3946_v41 = vpop.eup %3945  ;;  %v1971_v10 = vmul.f32 1.442695, %v1908_v5  ;;  %v1632_v11 = vpop.f32.mrb[53].mxu1 }
 0x2b5   : > { %vm1782_vm13 = vcmp.ge.f32.partialorder %v1632_v11, 0.0  ;;  %v1846_v14 = vmul.f32 0.2, %v1632_v11  ;;  %v5010_v15 = vmul.f32 %v3946_v41, %v2050_v9  ;;  %v2075_v5 = vpop.permute.xlu1 %2074 }
 0x2b6   : > { %3951 = vpow2.f32 %v1971_v10 }
 0x2b7   : > { %v1910_v18 = vsel %vm1782_vm13, %v1632_v11, %v1846_v14  ;;  %v5012_v19 = vpop.f32.mrb[54].mxu1  ;;  %3658 = vmatprep.mubr.msk.f32.mxu0 %vm2210_vm6, %v5010_v15 }
 0x2b8   : > { %v3948_v17 = vpop.eup %3947  ;;  %v1973_v20 = vmul.f32 1.442695, %v1910_v18  ;;  %v1638_v36 = vpop.f32.mrb[55].mxu1 }
 0x2b9   : > { %vm1784_vm14 = vcmp.ge.f32.partialorder %v1638_v36, 0.0  ;;  %v1848_v37 = vmul.f32 0.2, %v1638_v36  ;;  %v5016_v39 = vmul.f32 %v3948_v17, %v2055_v35 }
 0x2ba   : > { %3953 = vpow2.f32 %v1973_v20  ;;  %v2080_v20 = vpop.permute.xlu0 %2079 }
 0x2bb   : > { %v1912_v40 = vsel %vm1784_vm14, %v1638_v36, %v1848_v37  ;;  %v5018_v44 = vpop.f32.mrb[56].mxu1  ;;  %3659 = vmatmul.mubr.msk.f32.gmra.mrb[38].mxu0 %vm2210_vm6, %v5016_v39  ;;  %v2587_v45 = vpack.c.bf16 %v5016_v39, %v5010_v15 }
 0x2bc   : > { %v3950_v46 = vpop.eup %3949  ;;  %v1975_v43 = vmul.f32 1.442695, %v1912_v40  ;;  %v1644_v50 = vpop.f32.mrb[57].mxu1 }
 0x2bd   : > { %vm1786_vm15 = vcmp.ge.f32.partialorder %v1644_v50, 0.0  ;;  %v1850_v52 = vmul.f32 0.2, %v1644_v50  ;;  %v5024_v53 = vmul.f32 %v3950_v46, %v2060_v49 }
 0x2be   : > { %3955 = vpow2.f32 %v1975_v43 }
 0x2bf   : > { %v1914_v27 = vsel %vm1786_vm15, %v1644_v50, %v1850_v52  ;;  %v5026_v54 = vpop.f32.mrb[58].mxu1  ;;  %3661 = vmatprep.mubr.msk.f32.mxu0 %vm2210_vm6, %v5024_v53  ;;  %v2085_v52 = vpop.permute.xlu1 %2084 }
 0x2c0   : > { %v3952_v28 = vpop.eup %3951  ;;  %v1977_v16 = vmul.f32 1.442695, %v1914_v27  ;;  %v1650_v30 = vpop.f32.mrb[59].mxu1 }
 0x2c1   : > { %vm1788_vm0 = vcmp.ge.f32.partialorder %v1650_v30, 0.0  ;;  %v1852_v22 = vmul.f32 0.2, %v1650_v30  ;;  %v5030_v31 = vmul.f32 %v3952_v28, %v2065_v29 }
 0x2c2   : > { %3957 = vpow2.f32 %v1977_v16 }
 0x2c3   : > { %v1916_v32 = vsel %vm1788_vm0, %v1650_v30, %v1852_v22  ;;  %v5032_v34 = vpop.f32.mrb[60].mxu1  ;;  %3662 = vmatmul.mubr.msk.f32.gmra.mrb[40].mxu0 %vm2210_vm6, %v5030_v31  ;;  %v2588_v25 = vpack.c.bf16 %v5030_v31, %v5024_v53 }
 0x2c4   : > { %v3954_v55 = vpop.eup %3953  ;;  %v1979_v56 = vmul.f32 1.442695, %v1916_v32  ;;  %v1656_v58 = vpop.f32.mrb[61].mxu1 }
 0x2c5   : > { %vm1790_vm1 = vcmp.ge.f32.partialorder %v1656_v58, 0.0  ;;  %v1854_v60 = vmul.f32 0.2, %v1656_v58  ;;  %v5038_v61 = vmul.f32 %v3954_v55, %v2070_v26  ;;  %v2090_v26 = vpop.permute.xlu0 %2089 }
 0x2c6   : > { %3959 = vpow2.f32 %v1979_v56 }
 0x2c7   : > { %v1918_v63 = vsel %vm1790_vm1, %v1656_v58, %v1854_v60  ;;  %v5040_v0 = vpop.f32.mrb[62].mxu1  ;;  %3664 = vmatprep.mubr.msk.f32.mxu0 %vm2210_vm6, %v5038_v61 }
 0x2c8   : > { %v3956_v1 = vpop.eup %3955  ;;  %v1981_v41 = vmul.f32 1.442695, %v1918_v63  ;;  %v1662_v9 = vpop.f32.mrb[63].mxu1 }
 0x2c9   : > { %vm1792_vm2 = vcmp.ge.f32.partialorder %v1662_v9, 0.0  ;;  %v1856_v10 = vmul.f32 0.2, %v1662_v9  ;;  %v5044_v11 = vmul.f32 %v3956_v1, %v2075_v5 }
 0x2ca   : > { %3961 = vpow2.f32 %v1981_v41 }
 0x2cb   : > { %v1920_v14 = vsel %vm1792_vm2, %v1662_v9, %v1856_v10  ;;  %v5046_v18 = vpop.f32.mrb[64].mxu1  ;;  %3665 = vmatmul.mubr.msk.f32.gmra.mrb[42].mxu0 %vm2210_vm6, %v5044_v11  ;;  %v2589_v17 = vpack.c.bf16 %v5044_v11, %v5038_v61  ;;  %v2095_v9 = vpop.permute.xlu1 %2094 }
 0x2cc   : > { %v3958_v35 = vpop.eup %3957  ;;  %v1983_v36 = vmul.f32 1.442695, %v1920_v14  ;;  %v1668_v37 = vpop.f32.mrb[65].mxu1 }
 0x2cd   : > { %vm1794_vm3 = vcmp.ge.f32.partialorder %v1668_v37, 0.0  ;;  %v1858_v40 = vmul.f32 0.2, %v1668_v37  ;;  %v5052_v46 = vmul.f32 %v3958_v35, %v2080_v20 }
 0x2ce   : > { %3963 = vpow2.f32 %v1983_v36 }
 0x2cf   : > { %v1922_v49 = vsel %vm1794_vm3, %v1668_v37, %v1858_v40  ;;  %v5054_v43 = vpop.f32.mrb[66].mxu1  ;;  %3667 = vmatprep.mubr.msk.f32.mxu0 %vm2210_vm6, %v5052_v46 }
 0x2d0   : > { %v3960_v50 = vpop.eup %3959  ;;  %v1985_v27 = vmul.f32 1.442695, %v1922_v49  ;;  %v1674_v28 = vpop.f32.mrb[67].mxu1 }
 0x2d1   : > { %vm1796_vm4 = vcmp.ge.f32.partialorder %v1674_v28, 0.0  ;;  %v1860_v29 = vmul.f32 0.2, %v1674_v28  ;;  %v5058_v16 = vmul.f32 %v3960_v50, %v2085_v52  ;;  %v2100_v50 = vpop.permute.xlu0 %2099 }
 0x2d2   : > { %3965 = vpow2.f32 %v1985_v27 }
 0x2d3   : > { %v1924_v30 = vsel %vm1796_vm4, %v1674_v28, %v1860_v29  ;;  %v5060_v22 = vpop.f32.mrb[68].mxu1  ;;  %3668 = vmatmul.mubr.msk.f32.gmra.mrb[44].mxu0 %vm2210_vm6, %v5058_v16  ;;  %v2590_v32 = vpack.c.bf16 %v5058_v16, %v5052_v46  ;;  %vm1763_vm4 = vcmp.ge.f32.partialorder %v4960_v3, 0.0 }
 0x2d4   : > { %v3962_v55 = vpop.eup %3961  ;;  %v1987_v56 = vmul.f32 1.442695, %v1924_v30  ;;  %v1680_v58 = vpop.f32.mrb[69].mxu1 }
 0x2d5   : > { %vm1798_vm5 = vcmp.ge.f32.partialorder %v1680_v58, 0.0  ;;  %v1862_v60 = vmul.f32 0.2, %v1680_v58  ;;  %v5066_v63 = vmul.f32 %v3962_v55, %v2090_v26 }
 0x2d6   : > { %3967 = vpow2.f32 %v1987_v56  ;;  %v2105_v56 = vpop.permute.xlu1 %2104 }
 0x2d7   : > { %v1926_v1 = vsel %vm1798_vm5, %v1680_v58, %v1862_v60  ;;  %v5068_v5 = vpop.f32.mrb[70].mxu1  ;;  %3670 = vmatprep.mubr.msk.f32.mxu0 %vm2210_vm6, %v5066_v63  ;;  %vm1761_vm5 = vcmp.ge.f32.partialorder %v4958_v62, 0.0 }
 0x2d8   : > { %v3964_v41 = vpop.eup %3963  ;;  %v1989_v10 = vmul.f32 1.442695, %v1926_v1  ;;  %v1686_v14 = vpop.f32.mrb[71].mxu1 }
 0x2d9   : > { %vm1800_vm7 = vcmp.ge.f32.partialorder %v1686_v14, 0.0  ;;  %v1864_v35 = vmul.f32 0.2, %v1686_v14  ;;  %v5072_v20 = vmul.f32 %v3964_v41, %v2095_v9 }
 0x2da   : > { %3969 = vpow2.f32 %v1989_v10 }
 0x2db   : > { %v1928_v36 = vsel %vm1800_vm7, %v1686_v14, %v1864_v35  ;;  %v5074_v37 = vpop.f32.mrb[72].mxu1  ;;  %3671 = vmatmul.mubr.msk.f32.gmra.mrb[46].mxu0 %vm2210_vm6, %v5072_v20  ;;  %v2591_v40 = vpack.c.bf16 %v5072_v20, %v5066_v63  ;;  %vm1767_vm7 = vcmp.ge.f32.partialorder %v4964_v12, 0.0 }
 0x2dc   : > { %v3966_v49 = vpop.eup %3965  ;;  %v1991_v52 = vmul.f32 1.442695, %v1928_v36  ;;  %v1692_v27 = vpop.f32.mrb[73].mxu1 }
 0x2dd   : > { %vm1802_vm8 = vcmp.ge.f32.partialorder %v1692_v27, 0.0  ;;  %v1866_v28 = vmul.f32 0.2, %v1692_v27  ;;  %v2193_v29 = vmul.f32 %v3966_v49, %v2100_v50  ;;  %v2110_v36 = vpop.permute.xlu0 %2109 }
 0x2de   : > { %3971 = vpow2.f32 %v1991_v52 }
 0x2df   : > { %v1930_v30 = vsel %vm1802_vm8, %v1692_v27, %v1866_v28  ;;  %v5080_v55 = vpop.f32.mrb[74].mxu1  ;;  %3673 = vmatprep.mubr.msk.f32.mxu0 %vm2210_vm6, %v2193_v29  ;;  %vm1765_vm8 = vcmp.ge.f32.partialorder %v4962_v8, 0.0 }
 0x2e0   : > { %v3968_v26 = vpop.eup %3967  ;;  %v1993_v58 = vmul.f32 1.442695, %v1930_v30  ;;  %v1698_v60 = vpop.f32.mrb[75].mxu1 }
 0x2e1   : > { %vm1804_vm9 = vcmp.ge.f32.partialorder %v1698_v60, 0.0  ;;  %v1868_v1 = vmul.f32 0.2, %v1698_v60  ;;  %v2194_v41 = vmul.f32 %v3968_v26, %v2105_v56 }
 0x2e2   : > { %3973 = vpow2.f32 %v1993_v58 }
 0x2e3   : > { %v1932_v9 = vsel %vm1804_vm9, %v1698_v60, %v1868_v1  ;;  %v5083_v10 = vpop.f32.mrb[76].mxu1  ;;  %3674 = vmatmul.mubr.msk.f32.gmra.mrb[48].mxu0 %vm2210_vm6, %v2194_v41  ;;  %v2592_v14 = vpack.c.bf16 %v2194_v41, %v2193_v29  ;;  %v2115_v29 = vpop.permute.xlu1 %2114  ;;  %vm1771_vm9 = vcmp.ge.f32.partialorder %v4970_v42, 0.0 }
 0x2e4   : > { %v3970_v35 = vpop.eup %3969  ;;  %v1995_v49 = vmul.f32 1.442695, %v1932_v9  ;;  %v1704_v50 = vpop.f32.mrb[77].mxu1 }
 0x2e5   : > { %vm1806_vm10 = vcmp.ge.f32.partialorder %v1704_v50, 0.0  ;;  %v1870_v52 = vmul.f32 0.2, %v1704_v50  ;;  %3439 = vmatprep.subr.bf16.mxu1 %v2592_v14  ;;  %v2195_v27 = vmul.f32 %v3970_v35, %v2110_v36 }
 0x2e6   : > { %3975 = vpow2.f32 %v1995_v49  ;;  %3440 = vmatpush3.bf16.msra.mxu1 %v2584_v51  ;;  %v2120_v51 = vpop.permute.xlu0 %2119 }
 0x2e7   : > { %v1934_v28 = vsel %vm1806_vm10, %v1704_v50, %v1870_v52  ;;  %v5089_v30 = vpop.f32.mrb[78].mxu1  ;;  %3676 = vmatprep.mubr.msk.f32.mxu0 %vm2210_vm6, %v2195_v27  ;;  %vm1769_vm10 = vcmp.ge.f32.partialorder %v4966_v21, 0.0 }
 0x2e8   : > { %v3972_v26 = vpop.eup %3971  ;;  %v1997_v56 = vmul.f32 1.442695, %v1934_v28  ;;  %v1710_v58 = vpop.f32.mrb[79].mxu1 }
 0x2e9   : > { %vm1808_vm11 = vcmp.ge.f32.partialorder %v1710_v58, 0.0  ;;  %v1872_v60 = vmul.f32 0.2, %v1710_v58  ;;  %v2196_v1 = vmul.f32 %v3972_v26, %v2115_v29 }
 0x2ea   : > { %3977 = vpow2.f32 %v1997_v56 }
 0x2eb   : > { %v1936_v41 = vsel %vm1808_vm11, %v1710_v58, %v1872_v60  ;;  %v5092_v9 = vpop.f32.mrb[80].mxu1  ;;  %3677 = vmatmul.mubr.msk.f32.gmra.mrb[50].mxu0 %vm2210_vm6, %v2196_v1  ;;  %v2593_v38 = vpack.c.bf16 %v2196_v1, %v2195_v27  ;;  %v2125_v27 = vpop.permute.xlu1 %2124  ;;  %vm1775_vm11 = vcmp.ge.f32.partialorder %v4984_v13, 0.0 }
 0x2ec   : > { %v3974_v48 = vpop.eup %3973  ;;  %v1999_v14 = vmul.f32 1.442695, %v1936_v41  ;;  %v1716_v35 = vpop.f32.mrb[81].mxu1 }
 0x2ed   : > { %vm1810_vm12 = vcmp.ge.f32.partialorder %v1716_v35, 0.0  ;;  %v1874_v36 = vmul.f32 0.2, %v1716_v35  ;;  %3441 = vmatprep.subr.bf16.mxu1 %v2593_v38  ;;  %v2197_v49 = vmul.f32 %v3974_v48, %v2120_v51 }
 0x2ee   : > { %3979 = vpow2.f32 %v1999_v14  ;;  %3442 = vmatpush3.bf16.msra.mxu1 %v2585_v33  ;;  %v2130_v33 = vpop.permute.xlu0 %2129 }
 0x2ef   : > { %v1938_v50 = vsel %vm1810_vm12, %v1716_v35, %v1874_v36  ;;  %v5098_v52 = vpop.f32.mrb[82].mxu1  ;;  %3679 = vmatprep.mubr.msk.f32.mxu0 %vm2210_vm6, %v2197_v49  ;;  %vm1773_vm12 = vcmp.ge.f32.partialorder %v4976_v47, 0.0 }
 0x2f0   : > { %v3976_v28 = vpop.eup %3975  ;;  %v2001_v26 = vmul.f32 1.442695, %v1938_v50  ;;  %v1722_v29 = vpop.f32.mrb[83].mxu1 }
 0x2f1   : > { %vm1812_vm13 = vcmp.ge.f32.partialorder %v1722_v29, 0.0  ;;  %v1876_v56 = vmul.f32 0.2, %v1722_v29  ;;  %v2198_v58 = vmul.f32 %v3976_v28, %v2125_v27 }
 0x2f2   : > { %3981 = vpow2.f32 %v2001_v26 }
 0x2f3   : > { %v1940_v60 = vsel %vm1812_vm13, %v1722_v29, %v1876_v56  ;;  %v5101_v1 = vpop.f32.mrb[84].mxu1  ;;  %3680 = vmatmul.mubr.msk.f32.gmra.mrb[52].mxu0 %vm2210_vm6, %v2198_v58  ;;  %v2594_v2 = vpack.c.bf16 %v2198_v58, %v2197_v49  ;;  %v2135_v49 = vpop.permute.xlu1 %2134  ;;  %vm1779_vm13 = vcmp.ge.f32.partialorder %v4998_v59, 0.0 }
 0x2f4   : > { %v3978_v23 = vpop.eup %3977  ;;  %v2003_v41 = vmul.f32 1.442695, %v1940_v60  ;;  %v1728_v38 = vpop.f32.mrb[85].mxu1 }
 0x2f5   : > { %vm1814_vm14 = vcmp.ge.f32.partialorder %v1728_v38, 0.0  ;;  %v1878_v48 = vmul.f32 0.2, %v1728_v38  ;;  %3443 = vmatprep.subr.bf16.mxu1 %v2594_v2  ;;  %v2199_v51 = vmul.f32 %v3978_v23, %v2130_v33 }
 0x2f6   : > { %3983 = vpow2.f32 %v2003_v41  ;;  %3444 = vmatpush3.bf16.msra.mxu1 %v2586_v7  ;;  %v2140_v7 = vpop.permute.xlu0 %2139 }
 0x2f7   : > { %v1942_v14 = vsel %vm1814_vm14, %v1728_v38, %v1878_v48  ;;  %v5107_v35 = vpop.f32.mrb[86].mxu1  ;;  %3682 = vmatprep.mubr.msk.f32.mxu0 %vm2210_vm6, %v2199_v51  ;;  %v2145_v48 = vpop.permute.xlu1 %2144  ;;  %vm1777_vm14 = vcmp.ge.f32.partialorder %v4990_v24, 0.0 }
 0x2f8   : > { %v3980_v36 = vpop.eup %3979  ;;  %v2005_v50 = vmul.f32 1.442695, %v1942_v14  ;;  %v1734_v28 = vpop.f32.mrb[87].mxu1 }
 0x2f9   : > { %vm1816_vm15 = vcmp.ge.f32.partialorder %v1734_v28, 0.0  ;;  %v1880_v27 = vmul.f32 0.2, %v1734_v28  ;;  %v2200_v26 = vmul.f32 %v3980_v36, %v2135_v49 }
 0x2fa   : > { %3985 = vpow2.f32 %v2005_v50 }
 0x2fb   : > { %v1944_v29 = vsel %vm1816_vm15, %v1734_v28, %v1880_v27  ;;  %v5110_v56 = vpop.f32.mrb[88].mxu1  ;;  %3683 = vmatmul.mubr.msk.f32.gmra.mrb[54].mxu0 %vm2210_vm6, %v2200_v26  ;;  %v2595_v57 = vpack.c.bf16 %v2200_v26, %v2199_v51  ;;  %vm1783_vm15 = vcmp.ge.f32.partialorder %v5012_v19, 0.0 }
 0x2fc   : > { %v3982_v4 = vpop.eup %3981  ;;  %v2007_v58 = vmul.f32 1.442695, %v1944_v29  ;;  %v1740_v60 = vpop.f32.mrb[89].mxu1 }
 0x2fd   : > { %vm1818_vm0 = vcmp.ge.f32.partialorder %v1740_v60, 0.0  ;;  %v1882_v2 = vmul.f32 0.2, %v1740_v60  ;;  %3445 = vmatprep.subr.bf16.mxu1 %v2595_v57  ;;  %v2201_v23 = vmul.f32 %v3982_v4, %v2140_v7 }
 0x2fe   : > { %3987 = vpow2.f32 %v2007_v58  ;;  %3446 = vmatpush3.bf16.msra.mxu1 %v2587_v45  ;;  %v2150_v45 = vpop.permute.xlu0 %2149 }
 0x2ff   : > { %v1946_v33 = vsel %vm1818_vm0, %v1740_v60, %v1882_v2  ;;  %v5116_v41 = vpop.f32.mrb[90].mxu1  ;;  %3685 = vmatprep.mubr.msk.f32.mxu0 %vm2210_vm6, %v2201_v23  ;;  %v2155_v60 = vpop.permute.xlu1 %2154  ;;  %vm1781_vm0 = vcmp.ge.f32.partialorder %v5004_v6, 0.0 }
 0x300   : > { %v3984_v38 = vpop.eup %3983  ;;  %v2009_v51 = vmul.f32 1.442695, %v1946_v33  ;;  %v1746_v14 = vpop.f32.mrb[91].mxu1 }
 0x301   : > { %vm1820_vm1 = vcmp.ge.f32.partialorder %v1746_v14, 0.0  ;;  %v1884_v36 = vmul.f32 0.2, %v1746_v14  ;;  %v2202_v49 = vmul.f32 %v3984_v38, %v2145_v48 }
 0x302   : > { %3989 = vpow2.f32 %v2009_v51  ;;  %v2160_v53 = vpop.permute.xlu0 %2159 }
 0x303   : > { %v1948_v50 = vsel %vm1820_vm1, %v1746_v14, %v1884_v36  ;;  %v5119_v28 = vpop.f32.mrb[92].mxu1  ;;  %3686 = vmatmul.mubr.msk.f32.gmra.mrb[56].mxu0 %vm2210_vm6, %v2202_v49  ;;  %v2596_v15 = vpack.c.bf16 %v2202_v49, %v2201_v23  ;;  %v2165_v49 = vpop.permute.xlu1 %2164  ;;  %vm1787_vm1 = vcmp.ge.f32.partialorder %v5026_v54, 0.0 }
 0x304   : > { %v3986_v39 = vpop.eup %3985  ;;  %v2011_v27 = vmul.f32 1.442695, %v1948_v50  ;;  %v1752_v26 = vpop.f32.mrb[93].mxu1 }
 0x305   : > { %vm1822_vm2 = vcmp.ge.f32.partialorder %v1752_v26, 0.0  ;;  %v1886_v29 = vmul.f32 0.2, %v1752_v26  ;;  %3447 = vmatprep.subr.bf16.mxu1 %v2596_v15  ;;  %v2203_v57 = vmul.f32 %v3986_v39, %v2150_v45 }
 0x306   : > { %3991 = vpow2.f32 %v2011_v27  ;;  %3448 = vmatpush3.bf16.msra.mxu1 %v2588_v25  ;;  %v2170_v45 = vpop.permute.xlu0 %2169 }
 0x307   : > { %v1950_v4 = vsel %vm1822_vm2, %v1752_v26, %v1886_v29  ;;  %v5125_v7 = vpop.f32.mrb[94].mxu1  ;;  %3688 = vmatprep.mubr.msk.f32.mxu0 %vm2210_vm6, %v2203_v57  ;;  %v2175_v11 = vpop.permute.xlu1 %2174  ;;  %v1827_v29 = vmul.f32 0.2, %v4960_v3  ;;  %vm1785_vm2 = vcmp.ge.f32.partialorder %v5018_v44, 0.0 }
 0x308   : > { %v3988_v58 = vpop.eup %3987  ;;  %v2013_v2 = vmul.f32 1.442695, %v1950_v4  ;;  %v1758_v23 = vpop.f32.mrb[95].mxu1 }
 0x309   : > { %vm1824_vm3 = vcmp.ge.f32.partialorder %v1758_v23, 0.0  ;;  %v1888_v33 = vmul.f32 0.2, %v1758_v23  ;;  %v2204_v38 = vmul.f32 %v3988_v58, %v2155_v60 }
 0x30a   : > { %3993 = vpow2.f32 %v2013_v2  ;;  %v2640_v46 = vpop.trf.xlu0  ;;  %v1831_v2 = vmul.f32 0.2, %v4964_v12 }
 0x30b   : > { %v1952_v48 = vsel %vm1824_vm3, %v1758_v23, %v1888_v33  ;;  %3689 = vmatmul.mubr.msk.f32.gmra.mrb[58].mxu0 %vm2210_vm6, %v2204_v38  ;;  %v2597_v51 = vpack.c.bf16 %v2204_v38, %v2203_v57  ;;  %v1825_v57 = vmul.f32 0.2, %v4958_v62  ;;  %v5146_v16 = vpop.trf.xlu1  ;;  %2825 = vmatprep.mubr.bf16.mxu1 %v2640_v46  ;;  %vm1791_vm3 = vcmp.ge.f32.partialorder %v5040_v0, 0.0 }
 0x30c   : > { %v3990_v14 = vpop.eup %3989  ;;  %v2015_v31 = vmul.f32 1.442695, %v1952_v48 }
 0x30d   : > { %3449 = vmatprep.subr.bf16.mxu1 %v2597_v51  ;;  %v2205_v25 = vmul.f32 %v3990_v14, %v2160_v53  ;;  %v1889_v20 = vsel %vm1761_vm5, %v4958_v62, %v1825_v57  ;;  %v1895_v62 = vsel %vm1767_vm7, %v4964_v12, %v1831_v2  ;;  %v1833_v12 = vmul.f32 0.2, %v4966_v21 }
 0x30e   : > { %3995 = vpow2.f32 %v2015_v31  ;;  %3450 = vmatpush3.bf16.msra.mxu1 %v2589_v17  ;;  %v5155_v60 = vpop.trf.xlu0  ;;  %vm1795_vm5 = vcmp.ge.f32.partialorder %v5054_v43, 0.0  ;;  %vm1793_vm7 = vcmp.ge.f32.partialorder %v5046_v18, 0.0 }
 0x30f   : > { %3691 = vmatprep.mubr.msk.f32.mxu0 %vm2210_vm6, %v2205_v25  ;;  %v5161_v33 = vpop.trf.xlu1 }
 0x310   : > { %v3992_v36 = vpop.eup %3991 }
 0x311   : > { %v2206_v50 = vmul.f32 %v3992_v36, %v2165_v49 }
 0x312   : > { %v5173_v31 = vpop.trf.xlu0 }
 0x313   : > { %3692 = vmatmul.mubr.msk.f32.gmra.mrb[60].mxu0 %vm2210_vm6, %v2206_v50  ;;  %v2598_v15 = vpack.c.bf16 %v2206_v50, %v2205_v25  ;;  %v1835_v25 = vmul.f32 0.2, %v4970_v42  ;;  %v5179_v49 = vpop.trf.xlu1 }
 0x314   : > { %v3994_v39 = vpop.eup %3993 }
 0x315   : > { %3451 = vmatprep.subr.bf16.mxu1 %v2598_v15  ;;  %v2207_v27 = vmul.f32 %v3994_v39, %v2170_v45  ;;  %v1897_v39 = vsel %vm1769_vm10, %v4966_v21, %v1833_v12  ;;  %vm1803_vm10 = vcmp.ge.f32.partialorder %v5080_v55, 0.0 }
 0x316   : > { %3452 = vmatpush3.bf16.msra.mxu1 %v2590_v32  ;;  %v1891_v32 = vsel %vm1763_vm4, %v4960_v3, %v1827_v29  ;;  %v1829_v3 = vmul.f32 0.2, %v4962_v8  ;;  %vm1789_vm4 = vcmp.ge.f32.partialorder %v5032_v34, 0.0 }
 0x317   : > { %3694 = vmatprep.mubr.msk.f32.mxu0 %vm2210_vm6, %v2207_v27 }
 0x318   : > { %v3996_v61 = vpop.eup %3995  ;;  %v1893_v51 = vsel %vm1765_vm8, %v4962_v8, %v1829_v3  ;;  %v1899_v8 = vsel %vm1771_vm9, %v4970_v42, %v1835_v25  ;;  %v1837_v42 = vmul.f32 0.2, %v4976_v47  ;;  %vm1799_vm8 = vcmp.ge.f32.partialorder %v5068_v5, 0.0 }
 0x319   : > { %v2208_v17 = vmul.f32 %v3996_v61, %v2175_v11  ;;  %v5191_v61 = vpop.trf.xlu0  ;;  %v1839_v11 = vmul.f32 0.2, %v4984_v13  ;;  %vm1797_vm9 = vcmp.ge.f32.partialorder %v5060_v22, 0.0 }
 0x31b   : > { %3695 = vmatmul.mubr.msk.f32.gmra.mrb[62].mxu0 %vm2210_vm6, %v2208_v17  ;;  %v2599_v26 = vpack.c.bf16 %v2208_v17, %v2207_v27  ;;  %v1903_v21 = vsel %vm1775_vm11, %v4984_v13, %v1839_v11  ;;  %v1841_v13 = vmul.f32 0.2, %v4990_v24  ;;  %vm1801_vm11 = vcmp.ge.f32.partialorder %v5074_v37, 0.0 }
 0x31c   : > { %2680 = vmatprep.mubr.bf16.mxu0 %v2640_v46  ;;  %v1901_v46 = vsel %vm1773_vm12, %v4976_v47, %v1837_v42  ;;  %vm1807_vm12 = vcmp.ge.f32.partialorder %v5089_v30, 0.0 }
 0x31d   : > { %3453 = vmatprep.subr.bf16.mxu1 %v2599_v26  ;;  %v5197_v26 = vpop.trf.xlu1 }
 0x31e   : > { %3454 = vmatpush3.bf16.msra.mxu1 %v2591_v40 }
 0x321   : > { %2826 = vmatmul.mubr.bf16.vlgmr.msra.gmra.mrb[96].mxu1 %v5146_v16  ;;  %v5215_v3 = vpop.trf.xlu1 }
 0x322   : > { %2833 = vmatprep.mubr.bf16.mxu1 %v5155_v60 }
 0x329   : > { %2834 = vmatmul.mubr.bf16.gmra.mrb[100].mxu1 %v5161_v33 }
 0x32a   : > { %2841 = vmatprep.mubr.bf16.mxu1 %v5173_v31 }
 0x331   : > { %2842 = vmatmul.mubr.bf16.gmra.mrb[104].mxu1 %v5179_v49 }
 0x332   : > { %2849 = vmatprep.mubr.bf16.mxu1 %v5191_v61 }
 0x339   : > { %2850 = vmatmul.mubr.bf16.gmra.mrb[108].mxu1 %v5197_v26 }
 0x376   : > { %v3651_v4 = vpop.f32.mrb[32].mxu0 }
 0x377   : > { %v5150_v63 = vmul.f32 %v3651_v4, %v1891_v32  ;;  %v2377_v40 = vpop.f32.mrb[33].mxu0 }
 0x378   : > { %v5153_v58 = vmul.f32 %v2377_v40, %v1889_v20  ;;  %v5209_v20 = vpop.trf.xlu0  ;;  %v1843_v40 = vmul.f32 0.2, %v4998_v59 }
 0x379   : > { %2857 = vmatprep.mubr.bf16.mxu1 %v5209_v20 }
 0x37a   : > { %v2568_v23 = vpack.c.bf16 %v5150_v63, %v5153_v58  ;;  %2858 = vmatmul.mubr.bf16.gmra.mrb[112].mxu1 %v5215_v3  ;;  %v1907_v47 = vsel %vm1779_vm13, %v4998_v59, %v1843_v40  ;;  %v1845_v59 = vmul.f32 0.2, %v5004_v6  ;;  %v1861_v40 = vmul.f32 0.2, %v5060_v22 }
 0x37b   : > { %vm1805_vm13 = vcmp.ge.f32.partialorder %v5083_v10, 0.0 }
 0x37c   : > { %v5227_v12 = vpop.trf.xlu0  ;;  %v1909_v42 = vsel %vm1781_vm0, %v5004_v6, %v1845_v59  ;;  %vm1815_vm0 = vcmp.ge.f32.partialorder %v5107_v35, 0.0 }
 0x37d   : > { %2865 = vmatprep.mubr.bf16.mxu1 %v5227_v12 }
 0x37e   : > { %v3654_v38 = vpop.f32.mrb[34].mxu0 }
 0x37f   : > { %v5168_v48 = vmul.f32 %v3654_v38, %v1895_v62  ;;  %v2387_v14 = vpop.f32.mrb[35].mxu0 }
 0x380   : > { %v5171_v53 = vmul.f32 %v2387_v14, %v1893_v51  ;;  %v1905_v51 = vsel %vm1777_vm14, %v4990_v24, %v1841_v13  ;;  %vm1811_vm14 = vcmp.ge.f32.partialorder %v5098_v52, 0.0 }
 0x382   : > { %v2569_v36 = vpack.c.bf16 %v5168_v48, %v5171_v53 }
 0x386   : > { %v3657_v50 = vpop.f32.mrb[36].mxu0 }
 0x387   : > { %v5186_v15 = vmul.f32 %v3657_v50, %v1899_v8  ;;  %v2397_v45 = vpop.f32.mrb[37].mxu0  ;;  %v1847_v8 = vmul.f32 0.2, %v5012_v19 }
 0x388   : > { %v5189_v27 = vmul.f32 %v2397_v45, %v1897_v39  ;;  %v5233_v39 = vpop.trf.xlu1 }
 0x389   : > { %2866 = vmatmul.mubr.bf16.gmra.mrb[116].mxu1 %v5233_v39  ;;  %v1911_v24 = vsel %vm1783_vm15, %v5012_v19, %v1847_v8  ;;  %v1849_v19 = vmul.f32 0.2, %v5018_v44  ;;  %vm1809_vm15 = vcmp.ge.f32.partialorder %v5092_v9, 0.0 }
 0x38a   : > { %v2570_v17 = vpack.c.bf16 %v5186_v15, %v5189_v27 }
 0x38c   : > { %v5251_v13 = vpop.trf.xlu1 }
 0x38e   : > { %v3660_v29 = vpop.f32.mrb[38].mxu0 }
 0x38f   : > { %v5204_v57 = vmul.f32 %v3660_v29, %v1903_v21  ;;  %v2407_v32 = vpop.f32.mrb[39].mxu0 }
 0x390   : > { %v5207_v4 = vmul.f32 %v2407_v32, %v1901_v46  ;;  %v5245_v46 = vpop.trf.xlu0  ;;  %v1851_v32 = vmul.f32 0.2, %v5026_v54 }
 0x391   : > { %2873 = vmatprep.mubr.bf16.mxu1 %v5245_v46 }
 0x392   : > { %v2571_v2 = vpack.c.bf16 %v5204_v57, %v5207_v4  ;;  %2874 = vmatmul.mubr.bf16.gmra.mrb[120].mxu1 %v5251_v13  ;;  %v1915_v6 = vsel %vm1787_vm1, %v5026_v54, %v1851_v32  ;;  %v1853_v54 = vmul.f32 0.2, %v5032_v34  ;;  %vm1813_vm1 = vcmp.ge.f32.partialorder %v5101_v1, 0.0 }
 0x394   : > { %v5263_v59 = vpop.trf.xlu0 }
 0x395   : > { %2881 = vmatprep.mubr.bf16.mxu1 %v5263_v59 }
 0x396   : > { %v3663_v62 = vpop.f32.mrb[40].mxu0 }
 0x397   : > { %v5222_v38 = vmul.f32 %v3663_v62, %v1907_v47  ;;  %v2417_v14 = vpop.f32.mrb[41].mxu0 }
 0x398   : > { %v5225_v25 = vmul.f32 %v2417_v14, %v1905_v51  ;;  %v1913_v51 = vsel %vm1785_vm2, %v5018_v44, %v1849_v19  ;;  %v1917_v19 = vsel %vm1789_vm4, %v5032_v34, %v1853_v54  ;;  %vm1819_vm2 = vcmp.ge.f32.partialorder %v5116_v41, 0.0 }
 0x399   : > { %vm1823_vm4 = vcmp.ge.f32.partialorder %v5125_v7, 0.0 }
 0x39a   : > { %v2572_v50 = vpack.c.bf16 %v5222_v38, %v5225_v25 }
 0x39e   : > { %v3666_v45 = vpop.f32.mrb[42].mxu0 }
 0x39f   : > { %v5240_v11 = vmul.f32 %v3666_v45, %v1911_v24  ;;  %v2427_v21 = vpop.f32.mrb[43].mxu0  ;;  %v1855_v24 = vmul.f32 0.2, %v5040_v0  ;;  %v1857_v45 = vmul.f32 0.2, %v5046_v18 }
 0x3a0   : > { %v5243_v29 = vmul.f32 %v2427_v21, %v1909_v42  ;;  %v5269_v42 = vpop.trf.xlu1 }
 0x3a1   : > { %2882 = vmatmul.mubr.bf16.gmra.mrb[124].mxu1 %v5269_v42  ;;  %v1919_v44 = vsel %vm1791_vm3, %v5040_v0, %v1855_v24  ;;  %v1921_v34 = vsel %vm1793_vm7, %v5046_v18, %v1857_v45  ;;  %v1925_v45 = vsel %vm1797_vm9, %v5060_v22, %v1861_v40  ;;  %vm1817_vm3 = vcmp.ge.f32.partialorder %v5110_v56, 0.0 }
 0x3a2   : > { %v5553_v38 = vpack.c.bf16 %v5240_v11, %v5243_v29 }
 0x3a6   : > { %v3669_v47 = vpop.f32.mrb[44].mxu0 }
 0x3a7   : > { %v5258_v62 = vmul.f32 %v3669_v47, %v1915_v6  ;;  %v2437_v14 = vpop.f32.mrb[45].mxu0 }
 0x3a8   : > { %v5261_v8 = vmul.f32 %v2437_v14, %v1913_v51  ;;  %v1859_v51 = vmul.f32 0.2, %v5054_v43 }
 0x3aa   : > { %v1923_v0 = vsel %vm1795_vm5, %v5054_v43, %v1859_v51  ;;  %vm1821_vm5 = vcmp.ge.f32.partialorder %v5119_v28, 0.0  ;;  %v5554_v11 = vpack.c.bf16 %v5258_v62, %v5261_v8  ;;  %v2779_v8 = vld [vmem:[#allocation2 + $0x10] sm:$0xff] }
 0x3ae   : > { %v3672_v21 = vpop.f32.mrb[46].mxu0 }
 0x3af   : > { %v5276_v32 = vmul.f32 %v3672_v21, %v1919_v44  ;;  %v2447_v6 = vpop.f32.mrb[47].mxu0 }
 0x3b0   : > { %v5279_v47 = vmul.f32 %v2447_v6, %v1917_v19  ;;  %v1863_v19 = vmul.f32 0.2, %v5068_v5 }
 0x3b2   : > { %v2575_v14 = vpack.c.bf16 %v5276_v32, %v5279_v47  ;;  %v1927_v43 = vsel %vm1799_vm8, %v5068_v5, %v1863_v19 }
 0x3b6   : > { %v3675_v24 = vpop.f32.mrb[48].mxu0 }
 0x3b7   : > { %v2553_v44 = vmul.f32 %v3675_v24, %v1923_v0  ;;  %v2457_v54 = vpop.f32.mrb[49].mxu0 }
 0x3b8   : > { %v2552_v21 = vmul.f32 %v2457_v54, %v1921_v34  ;;  %v1865_v54 = vmul.f32 0.2, %v5074_v37 }
 0x3ba   : > { %v2576_v6 = vpack.c.bf16 %v2553_v44, %v2552_v21  ;;  %v1867_v44 = vmul.f32 0.2, %v5080_v55  ;;  %v1929_v58 = vsel %vm1801_vm11, %v5074_v37, %v1865_v54  ;;  %v1871_v21 = vmul.f32 0.2, %v5089_v30 }
 0x3bc   : > { %3375 = vmatprep.subr.bf16.mxu0 %v2576_v6  ;;  %v1931_v5 = vsel %vm1803_vm10, %v5080_v55, %v1867_v44  ;;  %v1869_v6 = vmul.f32 0.2, %v5083_v10  ;;  %v1935_v55 = vsel %vm1807_vm12, %v5089_v30, %v1871_v21 }
 0x3bd   : > { %3376 = vmatpush3.bf16.msra.mxu0 %v2568_v23 }
 0x3be   : > { %v3678_v51 = vpop.f32.mrb[50].mxu0  ;;  %v1933_v53 = vsel %vm1805_vm13, %v5083_v10, %v1869_v6 }
 0x3bf   : > { %v2555_v18 = vmul.f32 %v3678_v51, %v1927_v43  ;;  %v2467_v0 = vpop.f32.mrb[51].mxu0  ;;  %v1875_v51 = vmul.f32 0.2, %v5098_v52 }
 0x3c0   : > { %v2554_v24 = vmul.f32 %v2467_v0, %v1925_v45  ;;  %v1873_v45 = vmul.f32 0.2, %v5092_v9 }
 0x3c1   : > { %v1939_v30 = vsel %vm1811_vm14, %v5098_v52, %v1875_v51 }
 0x3c2   : > { %v2577_v34 = vpack.c.bf16 %v2555_v18, %v2554_v24  ;;  %v1937_v27 = vsel %vm1809_vm15, %v5092_v9, %v1873_v45  ;;  %v1879_v24 = vmul.f32 0.2, %v5107_v35  ;;  %v2782_v45 = vld [vmem:[#allocation2 + $0x28] sm:$0xff] }
 0x3c4   : > { %3377 = vmatprep.subr.bf16.mxu0 %v2577_v34  ;;  %v1877_v34 = vmul.f32 0.2, %v5101_v1  ;;  %v1943_v52 = vsel %vm1815_vm0, %v5107_v35, %v1879_v24 }
 0x3c5   : > { %3378 = vmatpush3.bf16.msra.mxu0 %v2569_v36 }
 0x3c6   : > { %v3681_v63 = vpop.f32.mrb[52].mxu0  ;;  %v1941_v4 = vsel %vm1813_vm1, %v5101_v1, %v1877_v34  ;;  %v2783_v34 = vld [vmem:[#allocation2 + $0x30] sm:$0xff] }
 0x3c7   : > { %v2557_v22 = vmul.f32 %v3681_v63, %v1931_v5  ;;  %v2477_v23 = vpop.f32.mrb[53].mxu0  ;;  %v1883_v5 = vmul.f32 0.2, %v5116_v41 }
 0x3c8   : > { %v2556_v40 = vmul.f32 %v2477_v23, %v1929_v58 }
 0x3c9   : > { %v1947_v35 = vsel %vm1819_vm2, %v5116_v41, %v1883_v5 }
 0x3ca   : > { %v2578_v19 = vpack.c.bf16 %v2557_v22, %v2556_v40  ;;  %v1881_v22 = vmul.f32 0.2, %v5110_v56  ;;  %v1887_v40 = vmul.f32 0.2, %v5125_v7 }
 0x3cc   : > { %3379 = vmatprep.subr.bf16.mxu0 %v2578_v19  ;;  %v1885_v19 = vmul.f32 0.2, %v5119_v28  ;;  %v1951_v41 = vsel %vm1823_vm4, %v5125_v7, %v1887_v40 }
 0x3cd   : > { %3380 = vmatpush3.bf16.msra.mxu0 %v2570_v17 }
 0x3ce   : > { %v3684_v48 = vpop.f32.mrb[54].mxu0  ;;  %v1949_v6 = vsel %vm1821_vm5, %v5119_v28, %v1885_v19 }
 0x3cf   : > { %v2559_v37 = vmul.f32 %v3684_v48, %v1935_v55  ;;  %v2487_v36 = vpop.f32.mrb[55].mxu0 }
 0x3d0   : > { %v2558_v43 = vmul.f32 %v2487_v36, %v1933_v53 }
 0x3d2   : > { %v2579_v18 = vpack.c.bf16 %v2559_v37, %v2558_v43 }
 0x3d4   : > { %3381 = vmatprep.subr.bf16.mxu0 %v2579_v18  ;;  %v2781_v18 = vld [vmem:[#allocation2 + $0x20] sm:$0xff] }
 0x3d5   : > { %3382 = vmatpush3.bf16.msra.mxu0 %v2571_v2 }
 0x3d6   : > { %v3687_v15 = vpop.f32.mrb[56].mxu0 }
 0x3d7   : > { %v2561_v10 = vmul.f32 %v3687_v15, %v1939_v30  ;;  %v2497_v17 = vpop.f32.mrb[57].mxu0 }
 0x3d8   : > { %v2560_v0 = vmul.f32 %v2497_v17, %v1937_v27 }
 0x3da   : > { %v2580_v44 = vpack.c.bf16 %v2561_v10, %v2560_v0 }
 0x3dc   : > { %3383 = vmatprep.subr.bf16.mxu0 %v2580_v44 }
 0x3dd   : > { %3384 = vmatpush3.bf16.msra.mxu0 %v2572_v50  ;;  %v1945_v50 = vsel %vm1817_vm3, %v5110_v56, %v1881_v22 }
 0x3de   : > { %v3690_v57 = vpop.f32.mrb[58].mxu0 }
 0x3df   : > { %v2563_v9 = vmul.f32 %v3690_v57, %v1943_v52  ;;  %v2507_v2 = vpop.f32.mrb[59].mxu0  ;;  %v2784_v52 = vld [vmem:[#allocation2 + $0x38] sm:$0xff] }
 0x3e0   : > { %v2562_v54 = vmul.f32 %v2507_v2, %v1941_v4 }
 0x3e2   : > { %v2581_v63 = vpack.c.bf16 %v2563_v9, %v2562_v54 }
 0x3e4   : > { %3385 = vmatprep.subr.bf16.mxu0 %v2581_v63 }
 0x3e5   : > { %3386 = vmatpush3.bf16.msra.mxu0 %v5553_v38  ;;  %v2785_v38 = vld [vmem:[#allocation2 + $0x40] sm:$0xff] }
 0x3e6   : > { %v3693_v25 = vpop.f32.mrb[60].mxu0 }
 0x3e7   : > { %v2565_v1 = vmul.f32 %v3693_v25, %v1947_v35  ;;  %v2517_v58 = vpop.f32.mrb[61].mxu0  ;;  %v2786_v35 = vld [vmem:[#allocation2 + $0x48] sm:$0xff] }
 0x3e8   : > { %v2564_v23 = vmul.f32 %v2517_v58, %v1945_v50 }
 0x3ea   : > { %v2582_v21 = vpack.c.bf16 %v2565_v1, %v2564_v23 }
 0x3ec   : > { %3387 = vmatprep.subr.bf16.mxu0 %v2582_v21 }
 0x3ed   : > { %3388 = vmatpush3.bf16.msra.mxu0 %v5554_v11  ;;  %v2787_v11 = vld [vmem:[#allocation2 + $0x50] sm:$0xff] }
 0x3ee   : > { %v3696_v29 = vpop.f32.mrb[62].mxu0 }
 0x3ef   : > { %v2567_v56 = vmul.f32 %v3696_v29, %v1951_v41  ;;  %v2527_v55 = vpop.f32.mrb[63].mxu0  ;;  %v2788_v41 = vld [vmem:[#allocation2 + $0x58] sm:$0xff] }
 0x3f0   : > { %v2566_v48 = vmul.f32 %v2527_v55, %v1949_v6 }
 0x3f2   : > { %v2583_v37 = vpack.c.bf16 %v2567_v56, %v2566_v48 }
 0x3f4   : > { %3389 = vmatprep.subr.bf16.mxu0 %v2583_v37  ;;  %v3455_v28 = vpop.f32.mrb[96].mxu1 }
 0x3f5   : > { %3390 = vmatpush3.bf16.msra.mxu0 %v2575_v14  ;;  %v3456_v7 = vpop.f32.mrb[97].mxu1 }
 0x3f8   : > { %2681 = vmatmul.mubr.bf16.vlgmr.msra.gmra.mrb[64].mxu0 %v5146_v16  ;;  %v3458_v16 = vpop.f32.mrb[98].mxu1 }
 0x3f9   : > { %2688 = vmatprep.mubr.bf16.mxu0 %v5155_v60  ;;  %v3459_v60 = vpop.f32.mrb[99].mxu1 }
 0x400   : > { %2689 = vmatmul.mubr.bf16.gmra.mrb[68].mxu0 %v5161_v33  ;;  %v3457_v33 = vadd.f32 %v3456_v7, %v3455_v28 }
 0x401   : > { %2696 = vmatprep.mubr.bf16.mxu0 %v5173_v31  ;;  %v3460_v31 = vadd.f32 %v3459_v60, %v3458_v16  ;;  %v2789_v16 = vld [vmem:[#allocation2 + $0x60] sm:$0xff]  ;;  %v2790_v60 = vld [vmem:[#allocation2 + $0x68] sm:$0xff] }
 0x408   : > { %2697 = vmatmul.mubr.bf16.gmra.mrb[72].mxu0 %v5179_v49  ;;  %v2777_v49 = vld [vmem:[#allocation2] sm:$0xff] }
 0x409   : > { %2704 = vmatprep.mubr.bf16.mxu0 %v5191_v61  ;;  %v2778_v61 = vld [vmem:[#allocation2 + $0x8] sm:$0xff] }
 0x410   : > { %2705 = vmatmul.mubr.bf16.gmra.mrb[76].mxu0 %v5197_v26  ;;  %v2890_v26 = vadd.f32 %v3457_v33, %v2777_v49 }
 0x411   : > { %2712 = vmatprep.mubr.bf16.mxu0 %v5209_v20  ;;  %v2891_v20 = vadd.f32 %v3460_v31, %v2778_v61 }
 0x412   : > { %2906 = vst.msk [vmem:[#allocation2] sm:$0xff] %vm2210_vm6, %v2890_v26 }
 0x413   : > { %2907 = vst.msk [vmem:[#allocation2 + $0x8] sm:$0xff] %vm2210_vm6, %v2891_v20 }
 0x418   : > { %2713 = vmatmul.mubr.bf16.gmra.mrb[80].mxu0 %v5215_v3  ;;  %v3461_v3 = vpop.f32.mrb[100].mxu1 }
 0x419   : > { %2720 = vmatprep.mubr.bf16.mxu0 %v5227_v12  ;;  %v3462_v12 = vpop.f32.mrb[101].mxu1 }
 0x420   : > { %2721 = vmatmul.mubr.bf16.gmra.mrb[84].mxu0 %v5233_v39  ;;  %v3464_v39 = vpop.f32.mrb[102].mxu1 }
 0x421   : > { %2728 = vmatprep.mubr.bf16.mxu0 %v5245_v46  ;;  %v3465_v46 = vpop.f32.mrb[103].mxu1 }
 0x422   : > { %v3466_v62 = vadd.f32 %v3465_v46, %v3464_v39  ;;  %v3467_v47 = vpop.f32.mrb[104].mxu1  ;;  %v2791_v39 = vld [vmem:[#allocation2 + $0x70] sm:$0xff]  ;;  %v2792_v46 = vld [vmem:[#allocation2 + $0x78] sm:$0xff] }
 0x423   : > { %v3468_v14 = vpop.f32.mrb[105].mxu1 }
 0x424   : > { %v3470_v53 = vpop.f32.mrb[106].mxu1  ;;  %v3469_v43 = vadd.f32 %v3468_v14, %v3467_v47  ;;  %v2601_v14 = vld [vmem:[#allocation3 + $0x8] sm:$0xff] }
 0x425   : > { %v3471_v36 = vpop.f32.mrb[107].mxu1 }
 0x426   : > { %v3472_v51 = vadd.f32 %v3471_v36, %v3470_v53  ;;  %v2894_v30 = vadd.f32 %v3469_v43, %v2781_v18  ;;  %v3473_v10 = vpop.f32.mrb[108].mxu1 }
 0x427   : > { %v3474_v27 = vpop.f32.mrb[109].mxu1 }
 0x428   : > { %2729 = vmatmul.mubr.bf16.gmra.mrb[88].mxu0 %v5251_v13  ;;  %v3463_v13 = vadd.f32 %v3462_v12, %v3461_v3  ;;  %v2895_v15 = vadd.f32 %v3472_v51, %v2782_v45  ;;  %2910 = vst.msk [vmem:[#allocation2 + $0x20] sm:$0xff] %vm2210_vm6, %v2894_v30  ;;  %v3476_v17 = vpop.f32.mrb[110].mxu1  ;;  %v3475_v24 = vadd.f32 %v3474_v27, %v3473_v10  ;;  %v2602_v45 = vld [vmem:[#allocation3 + $0x10] sm:$0xff]  ;;  %v2603_v27 = vld [vmem:[#allocation3 + $0x18] sm:$0xff] }
 0x429   : > { %2736 = vmatprep.mubr.bf16.mxu0 %v5263_v59  ;;  %v2780_v59 = vld [vmem:[#allocation2 + $0x18] sm:$0xff]  ;;  %v3477_v0 = vpop.f32.mrb[111].mxu1 }
 0x42a   : > { %v2893_v32 = vadd.f32 %v3466_v62, %v2780_v59  ;;  %2911 = vst.msk [vmem:[#allocation2 + $0x28] sm:$0xff] %vm2210_vm6, %v2895_v15  ;;  %v3478_v44 = vadd.f32 %v3477_v0, %v3476_v17  ;;  %v2896_v57 = vadd.f32 %v3475_v24, %v2783_v34  ;;  %v2600_v59 = vld [vmem:[#allocation3] sm:$0xff] }
 0x42c   : > { %2909 = vst.msk [vmem:[#allocation2 + $0x18] sm:$0xff] %vm2210_vm6, %v2893_v32  ;;  %v2897_v9 = vadd.f32 %v3478_v44, %v2784_v52  ;;  %2912 = vst.msk [vmem:[#allocation2 + $0x30] sm:$0xff] %vm2210_vm6, %v2896_v57  ;;  %v2604_v52 = vld [vmem:[#allocation3 + $0x20] sm:$0xff] }
 0x42e   : > { %2913 = vst.msk [vmem:[#allocation2 + $0x38] sm:$0xff] %vm2210_vm6, %v2897_v9 }
 0x430   : > { %2737 = vmatmul.mubr.bf16.gmra.mrb[92].mxu0 %v5269_v42  ;;  %v2892_v42 = vadd.f32 %v3463_v13, %v2779_v8 }
 0x432   : > { %2908 = vst.msk [vmem:[#allocation2 + $0x10] sm:$0xff] %vm2210_vm6, %v2892_v42 }
 0x44d   : > { %v3479_v4 = vpop.f32.mrb[112].mxu1 }
 0x44e   : > { %v3480_v2 = vpop.f32.mrb[113].mxu1 }
 0x44f   : > { %v3482_v54 = vpop.f32.mrb[114].mxu1  ;;  %v3481_v63 = vadd.f32 %v3480_v2, %v3479_v4  ;;  %v2605_v2 = vld [vmem:[#allocation3 + $0x28] sm:$0xff] }
 0x450   : > { %v3483_v5 = vpop.f32.mrb[115].mxu1 }
 0x451   : > { %v3484_v22 = vadd.f32 %v3483_v5, %v3482_v54  ;;  %v2898_v25 = vadd.f32 %v3481_v63, %v2785_v38 }
 0x453   : > { %v2899_v1 = vadd.f32 %v3484_v22, %v2786_v35  ;;  %2914 = vst.msk [vmem:[#allocation2 + $0x40] sm:$0xff] %vm2210_vm6, %v2898_v25  ;;  %v2606_v35 = vld [vmem:[#allocation3 + $0x30] sm:$0xff] }
 0x455   : > { %2915 = vst.msk [vmem:[#allocation2 + $0x48] sm:$0xff] %vm2210_vm6, %v2899_v1 }
 0x45c   : > { %v3485_v50 = vpop.f32.mrb[116].mxu1 }
 0x45d   : > { %v3486_v58 = vpop.f32.mrb[117].mxu1 }
 0x45e   : > { %v3488_v23 = vpop.f32.mrb[118].mxu1  ;;  %v3487_v21 = vadd.f32 %v3486_v58, %v3485_v50  ;;  %v2607_v58 = vld [vmem:[#allocation3 + $0x38] sm:$0xff] }
 0x45f   : > { %v3489_v40 = vpop.f32.mrb[119].mxu1 }
 0x460   : > { %v3490_v19 = vadd.f32 %v3489_v40, %v3488_v23  ;;  %v2900_v29 = vadd.f32 %v3487_v21, %v2787_v11 }
 0x462   : > { %v2901_v56 = vadd.f32 %v3490_v19, %v2788_v41  ;;  %2916 = vst.msk [vmem:[#allocation2 + $0x50] sm:$0xff] %vm2210_vm6, %v2900_v29  ;;  %v2608_v41 = vld [vmem:[#allocation3 + $0x40] sm:$0xff] }
 0x464   : > { %2917 = vst.msk [vmem:[#allocation2 + $0x58] sm:$0xff] %vm2210_vm6, %v2901_v56 }
 0x465   : > { %v3491_v6 = vpop.f32.mrb[120].mxu1 }
 0x466   : > { %v3492_v55 = vpop.f32.mrb[121].mxu1 }
 0x467   : > { %v3494_v48 = vpop.f32.mrb[122].mxu1  ;;  %v3493_v28 = vadd.f32 %v3492_v55, %v3491_v6  ;;  %v2609_v55 = vld [vmem:[#allocation3 + $0x48] sm:$0xff] }
 0x468   : > { %v3495_v37 = vpop.f32.mrb[123].mxu1 }
 0x469   : > { %v3496_v7 = vadd.f32 %v3495_v37, %v3494_v48  ;;  %v2902_v33 = vadd.f32 %v3493_v28, %v2789_v16 }
 0x46b   : > { %v2903_v31 = vadd.f32 %v3496_v7, %v2790_v60  ;;  %2918 = vst.msk [vmem:[#allocation2 + $0x60] sm:$0xff] %vm2210_vm6, %v2902_v33  ;;  %v2610_v60 = vld [vmem:[#allocation3 + $0x50] sm:$0xff] }
 0x46d   : > { %2919 = vst.msk [vmem:[#allocation2 + $0x68] sm:$0xff] %vm2210_vm6, %v2903_v31 }
 0x474   : > { %v3497_v49 = vpop.f32.mrb[124].mxu1 }
 0x475   : > { %v3498_v61 = vpop.f32.mrb[125].mxu1 }
 0x476   : > { %v3500_v26 = vpop.f32.mrb[126].mxu1  ;;  %v3499_v3 = vadd.f32 %v3498_v61, %v3497_v49  ;;  %v2611_v61 = vld [vmem:[#allocation3 + $0x58] sm:$0xff] }
 0x477   : > { %v3501_v20 = vpop.f32.mrb[127].mxu1 }
 0x478   : > { %v3502_v12 = vadd.f32 %v3501_v20, %v3500_v26  ;;  %v2904_v13 = vadd.f32 %v3499_v3, %v2791_v39 }
 0x47a   : > { %v2905_v62 = vadd.f32 %v3502_v12, %v2792_v46  ;;  %2920 = vst.msk [vmem:[#allocation2 + $0x70] sm:$0xff] %vm2210_vm6, %v2904_v13  ;;  %v2612_v46 = vld [vmem:[#allocation3 + $0x60] sm:$0xff] }
 0x47c   : > { %2921 = vst.msk [vmem:[#allocation2 + $0x78] sm:$0xff] %vm2210_vm6, %v2905_v62 }
 0x4cb   : > { %v3391_v8 = vpop.f32.mrb[64].mxu0 }
 0x4cc   : > { %v3392_v42 = vpop.f32.mrb[65].mxu0 }
 0x4cd   : > { %v3393_v32 = vadd.f32 %v3392_v42, %v3391_v8  ;;  %v3394_v47 = vpop.f32.mrb[66].mxu0 }
 0x4ce   : > { %v3395_v53 = vpop.f32.mrb[67].mxu0 }
 0x4cf   : > { %v2745_v36 = vadd.f32 %v3393_v32, %v2600_v59  ;;  %v3396_v43 = vadd.f32 %v3395_v53, %v3394_v47  ;;  %v2613_v59 = vld [vmem:[#allocation3 + $0x68] sm:$0xff] }
 0x4d1   : > { %2761 = vst [vmem:[#allocation3] sm:$0xff] %v2745_v36  ;;  %v2746_v51 = vadd.f32 %v3396_v43, %v2601_v14  ;;  %v2614_v36 = vld [vmem:[#allocation3 + $0x70] sm:$0xff] }
 0x4d3   : > { %2762 = vst [vmem:[#allocation3 + $0x8] sm:$0xff] %v2746_v51  ;;  %v3397_v18 = vpop.f32.mrb[68].mxu0 }
 0x4d4   : > { %v3398_v30 = vpop.f32.mrb[69].mxu0 }
 0x4d5   : > { %v3399_v15 = vadd.f32 %v3398_v30, %v3397_v18  ;;  %v3400_v10 = vpop.f32.mrb[70].mxu0 }
 0x4d6   : > { %v3401_v17 = vpop.f32.mrb[71].mxu0 }
 0x4d7   : > { %v2747_v0 = vadd.f32 %v3399_v15, %v2602_v45  ;;  %v3402_v24 = vadd.f32 %v3401_v17, %v3400_v10  ;;  %v2615_v45 = vld [vmem:[#allocation3 + $0x78] sm:$0xff]  ;;  %v2926_v17 = vld [vmem:[#allocation2] sm:$0xff] (!%p3260_p9) }
 0x4d8   : > { %2942 = vst.msk [vmem:[%s4468_s8] sm:$0xff] (!%p3260_p9), %vm2210_vm6, %v2926_v17 }
 0x4d9   : > { %2763 = vst [vmem:[#allocation3 + $0x10] sm:$0xff] %v2747_v0  ;;  %v2748_v44 = vadd.f32 %v3402_v24, %v2603_v27  ;;  %v2927_v0 = vld [vmem:[#allocation2 + $0x8] sm:$0xff] (!%p3260_p9)  ;;  %v2928_v24 = vld [vmem:[#allocation2 + $0x10] sm:$0xff] (!%p3260_p9) }
 0x4da   : > { %2943 = vst.msk [vmem:[%s4468_s8 + $0x8] sm:$0xff] (!%p3260_p9), %vm2210_vm6, %v2927_v0  ;;  %2944 = vst.msk [vmem:[%s4468_s8 + $0x10] sm:$0xff] (!%p3260_p9), %vm2210_vm6, %v2928_v24 }
 0x4db   : > { %2764 = vst [vmem:[#allocation3 + $0x18] sm:$0xff] %v2748_v44  ;;  %v3403_v34 = vpop.f32.mrb[72].mxu0  ;;  %v2929_v44 = vld [vmem:[#allocation2 + $0x18] sm:$0xff] (!%p3260_p9) }
 0x4dc   : > { %v3404_v57 = vpop.f32.mrb[73].mxu0  ;;  %2945 = vst.msk [vmem:[%s4468_s8 + $0x18] sm:$0xff] (!%p3260_p9), %vm2210_vm6, %v2929_v44 }
 0x4dd   : > { %v3405_v9 = vadd.f32 %v3404_v57, %v3403_v34  ;;  %v3406_v4 = vpop.f32.mrb[74].mxu0  ;;  %v2930_v34 = vld [vmem:[#allocation2 + $0x20] sm:$0xff] (!%p3260_p9)  ;;  %v2932_v57 = vld [vmem:[#allocation2 + $0x30] sm:$0xff] (!%p3260_p9) }
 0x4de   : > { %v3407_v54 = vpop.f32.mrb[75].mxu0  ;;  %2946 = vst.msk [vmem:[%s4468_s8 + $0x20] sm:$0xff] (!%p3260_p9), %vm2210_vm6, %v2930_v34  ;;  %2948 = vst.msk [vmem:[%s4468_s8 + $0x30] sm:$0xff] (!%p3260_p9), %vm2210_vm6, %v2932_v57 }
 0x4df   : > { %v2749_v5 = vadd.f32 %v3405_v9, %v2604_v52  ;;  %v3408_v63 = vadd.f32 %v3407_v54, %v3406_v4  ;;  %v2931_v52 = vld [vmem:[#allocation2 + $0x28] sm:$0xff] (!%p3260_p9)  ;;  %v2933_v9 = vld [vmem:[#allocation2 + $0x38] sm:$0xff] (!%p3260_p9)  ;;  %v2934_v4 = vld [vmem:[#allocation2 + $0x40] sm:$0xff] (!%p3260_p9) }
 0x4e0   : > { %2947 = vst.msk [vmem:[%s4468_s8 + $0x28] sm:$0xff] (!%p3260_p9), %vm2210_vm6, %v2931_v52  ;;  %2949 = vst.msk [vmem:[%s4468_s8 + $0x38] sm:$0xff] (!%p3260_p9), %vm2210_vm6, %v2933_v9  ;;  %v2936_v54 = vld [vmem:[#allocation2 + $0x50] sm:$0xff] (!%p3260_p9) }
 0x4e1   : > { %2765 = vst [vmem:[#allocation3 + $0x20] sm:$0xff] %v2749_v5  ;;  %v2750_v22 = vadd.f32 %v3408_v63, %v2605_v2  ;;  %2950 = vst.msk [vmem:[%s4468_s8 + $0x40] sm:$0xff] (!%p3260_p9), %vm2210_vm6, %v2934_v4  ;;  %v2935_v2 = vld [vmem:[#allocation2 + $0x48] sm:$0xff] (!%p3260_p9)  ;;  %v2937_v5 = vld [vmem:[#allocation2 + $0x58] sm:$0xff] (!%p3260_p9) }
 0x4e2   : > { %2951 = vst.msk [vmem:[%s4468_s8 + $0x48] sm:$0xff] (!%p3260_p9), %vm2210_vm6, %v2935_v2  ;;  %2952 = vst.msk [vmem:[%s4468_s8 + $0x50] sm:$0xff] (!%p3260_p9), %vm2210_vm6, %v2936_v54  ;;  %v2938_v63 = vld [vmem:[#allocation2 + $0x60] sm:$0xff] (!%p3260_p9) }
 0x4e3   : > { %2766 = vst [vmem:[#allocation3 + $0x28] sm:$0xff] %v2750_v22  ;;  %v3409_v38 = vpop.f32.mrb[76].mxu0  ;;  %2953 = vst.msk [vmem:[%s4468_s8 + $0x58] sm:$0xff] (!%p3260_p9), %vm2210_vm6, %v2937_v5  ;;  %v2939_v22 = vld [vmem:[#allocation2 + $0x68] sm:$0xff] (!%p3260_p9) }
 0x4e4   : > { %v3410_v25 = vpop.f32.mrb[77].mxu0  ;;  %2954 = vst.msk [vmem:[%s4468_s8 + $0x60] sm:$0xff] (!%p3260_p9), %vm2210_vm6, %v2938_v63  ;;  %2955 = vst.msk [vmem:[%s4468_s8 + $0x68] sm:$0xff] (!%p3260_p9), %vm2210_vm6, %v2939_v22 }
 0x4e5   : > { %v3411_v1 = vadd.f32 %v3410_v25, %v3409_v38  ;;  %v3412_v50 = vpop.f32.mrb[78].mxu0  ;;  %v2940_v38 = vld [vmem:[#allocation2 + $0x70] sm:$0xff] (!%p3260_p9)  ;;  %v2958_v25 = vld [vmem:[#allocation3] sm:$0xff] (!%p3260_p9) }
 0x4e6   : > { %v3413_v23 = vpop.f32.mrb[79].mxu0  ;;  %2956 = vst.msk [vmem:[%s4468_s8 + $0x70] sm:$0xff] (!%p3260_p9), %vm2210_vm6, %v2940_v38  ;;  %2974 = vst [vmem:[%s4470_s10] sm:$0xff] (!%p3260_p9), %v2958_v25 }
 0x4e7   : > { %v2751_v40 = vadd.f32 %v3411_v1, %v2606_v35  ;;  %v3414_v21 = vadd.f32 %v3413_v23, %v3412_v50  ;;  %v2941_v35 = vld [vmem:[#allocation2 + $0x78] sm:$0xff] (!%p3260_p9)  ;;  %v2959_v1 = vld [vmem:[#allocation3 + $0x8] sm:$0xff] (!%p3260_p9)  ;;  %v2960_v50 = vld [vmem:[#allocation3 + $0x10] sm:$0xff] (!%p3260_p9) }
 0x4e8   : > { %2957 = vst.msk [vmem:[%s4468_s8 + $0x78] sm:$0xff] (!%p3260_p9), %vm2210_vm6, %v2941_v35  ;;  %2975 = vst [vmem:[%s4470_s10 + $0x8] sm:$0xff] (!%p3260_p9), %v2959_v1  ;;  %v2962_v23 = vld [vmem:[#allocation3 + $0x20] sm:$0xff] (!%p3260_p9) }
 0x4e9   : > { %2767 = vst [vmem:[#allocation3 + $0x30] sm:$0xff] %v2751_v40  ;;  %v2752_v19 = vadd.f32 %v3414_v21, %v2607_v58  ;;  %v2961_v58 = vld [vmem:[#allocation3 + $0x18] sm:$0xff] (!%p3260_p9)  ;;  %2976 = vst [vmem:[%s4470_s10 + $0x10] sm:$0xff] (!%p3260_p9), %v2960_v50 }
 0x4ea   : > { %2977 = vst [vmem:[%s4470_s10 + $0x18] sm:$0xff] (!%p3260_p9), %v2961_v58  ;;  %2978 = vst [vmem:[%s4470_s10 + $0x20] sm:$0xff] (!%p3260_p9), %v2962_v23  ;;  %v2963_v40 = vld [vmem:[#allocation3 + $0x28] sm:$0xff] (!%p3260_p9) }
 0x4eb   : > { %2768 = vst [vmem:[#allocation3 + $0x38] sm:$0xff] %v2752_v19  ;;  %v3415_v11 = vpop.f32.mrb[80].mxu0  ;;  %2979 = vst [vmem:[%s4470_s10 + $0x28] sm:$0xff] (!%p3260_p9), %v2963_v40 }
 0x4ec   : > { %v3416_v29 = vpop.f32.mrb[81].mxu0 }
 0x4ed   : > { %v3417_v56 = vadd.f32 %v3416_v29, %v3415_v11  ;;  %v3418_v6 = vpop.f32.mrb[82].mxu0 }
 0x4ee   : > { %v3419_v48 = vpop.f32.mrb[83].mxu0 }
 0x4ef   : > { %v2753_v37 = vadd.f32 %v3417_v56, %v2608_v41  ;;  %v3420_v28 = vadd.f32 %v3419_v48, %v3418_v6 }
 0x4f0   : > { %v2964_v21 = vld [vmem:[#allocation3 + $0x30] sm:$0xff] (!%p3260_p9) }
 0x4f1   : > { %2769 = vst [vmem:[#allocation3 + $0x40] sm:$0xff] %v2753_v37  ;;  %v2754_v7 = vadd.f32 %v3420_v28, %v2609_v55  ;;  %2980 = vst [vmem:[%s4470_s10 + $0x30] sm:$0xff] (!%p3260_p9), %v2964_v21 }
 0x4f2   : > { %v2965_v19 = vld [vmem:[#allocation3 + $0x38] sm:$0xff] (!%p3260_p9) }
 0x4f3   : > { %2770 = vst [vmem:[#allocation3 + $0x48] sm:$0xff] %v2754_v7  ;;  %v3421_v16 = vpop.f32.mrb[84].mxu0  ;;  %2981 = vst [vmem:[%s4470_s10 + $0x38] sm:$0xff] (!%p3260_p9), %v2965_v19 }
 0x4f4   : > { %v3422_v33 = vpop.f32.mrb[85].mxu0 }
 0x4f5   : > { %v3423_v31 = vadd.f32 %v3422_v33, %v3421_v16  ;;  %v3424_v49 = vpop.f32.mrb[86].mxu0 }
 0x4f6   : > { %v3425_v26 = vpop.f32.mrb[87].mxu0 }
 0x4f7   : > { %v2755_v20 = vadd.f32 %v3423_v31, %v2610_v60  ;;  %v3426_v3 = vadd.f32 %v3425_v26, %v3424_v49 }
 0x4f8   : > { %v2966_v11 = vld [vmem:[#allocation3 + $0x40] sm:$0xff] (!%p3260_p9) }
 0x4f9   : > { %2771 = vst [vmem:[#allocation3 + $0x50] sm:$0xff] %v2755_v20  ;;  %v2756_v12 = vadd.f32 %v3426_v3, %v2611_v61  ;;  %2982 = vst [vmem:[%s4470_s10 + $0x40] sm:$0xff] (!%p3260_p9), %v2966_v11 }
 0x4fa   : > { %v2967_v41 = vld [vmem:[#allocation3 + $0x48] sm:$0xff] (!%p3260_p9) }
 0x4fb   : > { %2772 = vst [vmem:[#allocation3 + $0x58] sm:$0xff] %v2756_v12  ;;  %v3427_v39 = vpop.f32.mrb[88].mxu0  ;;  %2983 = vst [vmem:[%s4470_s10 + $0x48] sm:$0xff] (!%p3260_p9), %v2967_v41 }
 0x4fc   : > { %v3428_v13 = vpop.f32.mrb[89].mxu0 }
 0x4fd   : > { %v3429_v62 = vadd.f32 %v3428_v13, %v3427_v39  ;;  %v3430_v8 = vpop.f32.mrb[90].mxu0 }
 0x4fe   : > { %v3431_v42 = vpop.f32.mrb[91].mxu0 }
 0x4ff   : > { %v2757_v32 = vadd.f32 %v3429_v62, %v2612_v46  ;;  %v3432_v47 = vadd.f32 %v3431_v42, %v3430_v8 }
 0x500   : > { %v2968_v29 = vld [vmem:[#allocation3 + $0x50] sm:$0xff] (!%p3260_p9) }
 0x501   : > { %2773 = vst [vmem:[#allocation3 + $0x60] sm:$0xff] %v2757_v32  ;;  %v2758_v14 = vadd.f32 %v3432_v47, %v2613_v59  ;;  %2984 = vst [vmem:[%s4470_s10 + $0x50] sm:$0xff] (!%p3260_p9), %v2968_v29 }
 0x502   : > { %v2969_v56 = vld [vmem:[#allocation3 + $0x58] sm:$0xff] (!%p3260_p9) }
 0x503   : > { %2774 = vst [vmem:[#allocation3 + $0x68] sm:$0xff] %v2758_v14  ;;  %v3433_v53 = vpop.f32.mrb[92].mxu0  ;;  %2985 = vst [vmem:[%s4470_s10 + $0x58] sm:$0xff] (!%p3260_p9), %v2969_v56 }
 0x504   : > { %v3434_v43 = vpop.f32.mrb[93].mxu0 }
 0x505   : > { %v3435_v51 = vadd.f32 %v3434_v43, %v3433_v53  ;;  %v3436_v18 = vpop.f32.mrb[94].mxu0  ;;  %2925 = sbr.rel (%p3260_p9) target bundleno = 1300 (0x514), region = 64 }
 0x506   : > { %v3437_v30 = vpop.f32.mrb[95].mxu0 }
 0x507   : > { %v2759_v15 = vadd.f32 %v3435_v51, %v2614_v36  ;;  %v3438_v10 = vadd.f32 %v3437_v30, %v3436_v18 }
 0x508   : > { %v2970_v6 = vld [vmem:[#allocation3 + $0x60] sm:$0xff] (!%p3260_p9) }
 0x509   : > { %2775 = vst [vmem:[#allocation3 + $0x70] sm:$0xff] %v2759_v15  ;;  %v2760_v27 = vadd.f32 %v3438_v10, %v2615_v45  ;;  %2986 = vst [vmem:[%s4470_s10 + $0x60] sm:$0xff] (!%p3260_p9), %v2970_v6 }
 0x50a   : > { %v2971_v55 = vld [vmem:[#allocation3 + $0x68] sm:$0xff] (!%p3260_p9) }
 0x50b   : > { %2776 = vst [vmem:[#allocation3 + $0x78] sm:$0xff] %v2760_v27  ;;  %2987 = vst [vmem:[%s4470_s10 + $0x68] sm:$0xff] (!%p3260_p9), %v2971_v55 }
 0x510   : > { %v2972_v48 = vld [vmem:[#allocation3 + $0x70] sm:$0xff] }
 0x511   : > { %2988 = vst [vmem:[%s4470_s10 + $0x70] sm:$0xff] %v2972_v48 }
 0x512   : > { %v2973_v37 = vld [vmem:[#allocation3 + $0x78] sm:$0xff] }
 0x513   : > { %2989 = vst [vmem:[%s4470_s10 + $0x78] sm:$0xff] %v2973_v37 }
 0x514 PF: > { %s3269_s11 = sshll.u32 %s4171_s12, 11  ;;  %s5555_s19 = sld [smem:[#allocation23_spill]] }
 0x515   : > { %s3012_s21 = sshll.u32 %s4470_s10, 4  ;;  %s5446_s14 = scalar_lea.sflag [#allocation6], %s393_s5  ;;  %s5442_s21 = int_to_ptr.vmem [resolvable:$true] %s3012_s21 }
 0x516   : > { %s4057_s30 = scalar_lea.vmem %s5442_s21, 2048  ;;  %p5556_p10 = scmp.ne.s32.totalorder %s5540_s4, 0 }
 0x517   : > { %p4058_p1 = scmp.ne.s32.totalorder %s5442_s21, %s4057_s30  ;;  %s4192_s12 = smov [#allocation9]  }
 0x518   : > { %s4061_s26 = sshll.u32 %s4192_s12, 4  ;;  %s4062_s26 = int_to_ptr.vmem [resolvable:$false] %s4061_s26 }
 0x519   : > { %p4059_p11 = pnand %p4058_p1, %p5556_p10  ;;  %s4063_s3 = scalar_lea.vmem %s4062_s26, 4096 }
 0x51a   : > { %s5439_s24 = scalar_lea.hbm %s5555_s19, %s3269_s11  ;;  %p4064_p2 = scmp.lt.s32.totalorder %s5442_s21, %s4062_s26 }
 0x51b   : > { %p4060_p12 = pneg %p4059_p11  ;;  %p4065_p13 = scmp.lt.s32.totalorder %s4063_s3, %s4057_s30 }
 0x51d   : > { %p4066_p0 = por %p4065_p13, %p4064_p2 }
 0x51f   : > { %p4067_p4 = pnand %p4066_p0, %p4060_p12 }
 0x521   : > { %4070 = shalt.err (!%p4067_p4)
}
 0x522   : > { %s4071_s5 = scalar_lea.hbm %s5439_s24, 2048  ;;  %s4075_s13 = scalar_lea.hbm %s5555_s19, 4096 }
 0x523   : > { %p4072_p8 = scmp.ne.s32.totalorder %s5439_s24, %s4071_s5  ;;  %p4076_p3 = scmp.lt.u32.totalorder %s5439_s24, %s5555_s19 }
 0x524   : > { %p4077_p6 = scmp.lt.u32.totalorder %s4075_s13, %s4071_s5  ;;  %p4079_p1 = scmp.lt.u32.totalorder %s4071_s5, %s5439_s24 }
 0x525   : > { %p4073_p5 = pnand %p4072_p8, %p5556_p10 }
 0x526   : > { %p4078_p9 = por %p4077_p6, %p4076_p3 }
 0x527   : > { %p4074_p7 = pneg %p4073_p5 }
 0x528   : > { %p4080_p11 = por %p4079_p1, %p4078_p9 }
 0x52a   : > { %p4081_p12 = pnand %p4080_p11, %p4074_p7 }
 0x52c   : > { %4084 = shalt.err (!%p4081_p12)
}
 0x52d   : > { %s4193_s25 = smov 128   ;;  %s4194_s11 = smov 8  }
 0x52e   : > { %3765 = dma.vmem_to_hbm [thread:$0]  (%p5556_p10), %s5442_s21, 2048, %s5439_s24, %s5446_s14, %s4193_s25, %s4193_s25, %s4194_s11  }
 0x52f PF: > { %p3779_p2 = scmp.ge.s32.totalorder %s4183_s15, 2  ;;  %s3035_s8 = sand.u32 1, %s4143_s27  }
 0x530   : > { %p5557_p13 = scmp.ne.s32.totalorder %s5542_s17, 0  ;;  %s3036_s23 = scalar_lea.sflag [#allocation6], %s3035_s8 }
 0x532   : > { %p3775_p0 = pnand %p3779_p2, %p5557_p13 }
 0x534   : > { %4138 = dma.done.wait (!%p3775_p0), %s3036_s23, 2048  }
 0x535   : > { %4140 = vsyncadd (!%p3775_p0), %s3036_s23, 4294965248  ;;  %s28_s15 = sadd.s32 1, %s4183_s15   ;;  %s5558_s30 = sld [smem:[#allocation18_spill]] }
 0x536   : > { %p25_p4 = scmp.ge.s32.totalorder %s28_s15, 6   ;;  %s5559_s4 = sld [smem:[#allocation13_spill]] }
 0x537   : > { %s5560_s10 = sld [smem:[#allocation19_spill]]  ;;  %s5561_s11 = sld [smem:[#allocation14_spill]] }
 0x538   : > { %s5562_s12 = sld [smem:[#allocation15_spill]]  ;;  %s5563_s13 = sld [smem:[#allocation16_spill]] }
 0x539   : > { %s5564_s14 = sld [smem:[#allocation17_spill]]  ;;  %s5565_s27 = smov %s4147_s28 }
 0x53a   : > { %s5566_s28 = smov %s4151_s29  ;;  %27 = sbr.rel (!%p25_p4) target bundleno = 16 (0x10), region = 126 }
 0x53b   : > { %s5567_s29 = smov %s5558_s30  ;;  %s5568_s30 = smov %s4159_s9 }
 0x53c   : > { %s5569_s9 = smov %s5559_s4 }
 0x541   :  { %3041 = vsyncpa [#allocation5], 1 }
 0x542   :  { %3043 = vsyncpa [#allocation5 + $0x1], 1 }
 0x543   :  { %3044 = vsyncpa [#allocation8], 1 }
 0x544   :  { %3046 = vsyncpa [#allocation8 + $0x1], 1 }
 0x545   :  { %3047 = vsyncpa [#allocation6], 1 }
 0x546   :  { %3049 = vsyncpa [#allocation6 + $0x1], 1 }

</bundles_post_ra>
